<compile_context>
chip_gen: v6e
topology: v6e:2x2x1
jax: 0.10.0
libtpu: 0.0.40
codegen_flags: <defaults>
</compile_context>

<pallas_src>
import jax
import jax.numpy as jnp
from jax.experimental import pallas as pl
from jax.experimental.pallas import tpu as pltpu

# ----------------------------- configuration --------------------------------
B = 2                  # batch
T_IN = 2048            # input samples @ 32 kHz
ORIG, NEW = 2, 1       # 32000 -> 16000  => decimate by 2
LPF_WIDTH = 6          # torchaudio default lowpass_filter_width
HALF = LPF_WIDTH * ORIG            # 12 taps each side
KTAPS = 2 * HALF + 1               # 25 FIR taps
T_OUT = T_IN // ORIG               # 1024 samples @ 16 kHz
FRAME = 128                        # synthetic feature-extractor frame length
S = T_OUT // FRAME                 # 8 frames ("sequence length")
H = 128                            # hidden size (wavlm-large: 1024)
N_HEADS = 4
D_HEAD = H // N_HEADS
FFN = 4 * H
NUM_CLASSES = 182
NUM_CLASSES_PAD = 256              # lane-dense head output, sliced outside
WIN = ORIG * (FRAME - 1) + KTAPS   # raw-audio samples feeding one frame (279)
WIN_PAD = 384                      # lane-dense (3 * 128)
BS = B * S                         # flattened matmul M dimension (16)
STACK = N_HEADS * BS               # 64 stacked (head, frame) attention rows
TALL_ROWS = WIN_PAD + FFN          # 896: [wproj | w2] stacked on sublanes
ENC_COLS = 3 * H + H + FFN + NUM_CLASSES_PAD  # 1280: [wqkv|wo|w1|head_w]


# ------------------------------- helpers -------------------------------------
def _layernorm(x, g, b, eps=1e-5):
    mu = jnp.mean(x, axis=-1, keepdims=True)
    var = jnp.mean((x - mu) ** 2, axis=-1, keepdims=True)
    return (x - mu) * jax.lax.rsqrt(var + eps) * g + b


def make_resample_filter():
    # deterministic windowed-sinc lowpass (stand-in for torchaudio Resample kernel)
    idx = jnp.arange(-HALF, HALF + 1, dtype=jnp.float32)
    cutoff = 0.99 * 0.5 / ORIG                       # rolloff * Nyquist(out)/fs(in)
    window = jnp.cos(jnp.pi * idx / (2 * HALF + 2)) ** 2
    filt = 2.0 * cutoff * jnp.sinc(2.0 * cutoff * idx) * window
    return filt.astype(jnp.float32)                  # (KTAPS,)


def fold_resample_into_proj(w_feat, filt):
    # feats[s,h] = sum_j x16[s*F+j] W[j,h] = sum_m x_pad[2sF+m] W_fused[m,h]
    # with W_fused[m,h] = sum_j filt[m-2j] W[j,h]  (0 <= m-2j < KTAPS).
    m = jnp.arange(WIN_PAD)[:, None]
    j = jnp.arange(FRAME)[None, :]
    d = m - ORIG * j
    taps = jnp.where((d >= 0) & (d < KTAPS),
                     filt[jnp.clip(d, 0, KTAPS - 1)], 0.0)        # (WIN_PAD, FRAME)
    return taps @ w_feat                                          # (WIN_PAD, H) f32


# ----------------------------- fused Pallas kernel ---------------------------
def _wavlm_fused_kernel(win_ref, tallw_ref, encw_ref, vp_ref, wp_ref, aux_ref,
                        out_ref):
    bf16 = jnp.bfloat16
    f32 = jnp.float32

    # ---- unpack packed parameter slabs (static, vreg-aligned slices) ----
    bproj, lnp_g, lnp_b = vp_ref[0:1, :], vp_ref[1:2, :], vp_ref[2:3, :]
    ln1_g, ln1_b, bo = vp_ref[3:4, :], vp_ref[4:5, :], vp_ref[5:6, :]
    ln2_g, ln2_b, b2 = vp_ref[6:7, :], vp_ref[7:8, :], vp_ref[8:9, :]
    bqkv = wp_ref[0:1, 0:3 * H]
    b1 = wp_ref[1:2, :]
    head_b = wp_ref[2:3, 0:NUM_CLASSES_PAD]
    mask = aux_ref[0:STACK, :]                      # (64,64) head+batch block-diag
    poolm = aux_ref[STACK:STACK + B, 0:BS]          # (B,BS) mean-pool matrix (1/S)

    wproj = tallw_ref[0:WIN_PAD, :]                 # (384,128) bf16
    w2 = tallw_ref[WIN_PAD:WIN_PAD + FFN, :]        # (512,128) bf16
    wqkv = encw_ref[:, 0:3 * H]                     # (128,384) bf16 (scale folded)
    wo = encw_ref[:, 3 * H:4 * H]                   # (128,128) bf16
    w1 = encw_ref[:, 4 * H:4 * H + FFN]             # (128,512) bf16
    head_w = encw_ref[:, 4 * H + FFN:ENC_COLS]      # (128,256) bf16

    # ---- resample + framing + feature projection (FIR folded into wproj) ----
    h = jnp.dot(win_ref[...], wproj, preferred_element_type=f32) + bproj
    h = _layernorm(h, lnp_g, lnp_b)
    feats = jax.nn.gelu(h)                          # (BS,H) f32
    # TODO(synk): jax.nn.gelu is the tanh approximation; PyTorch nn.GELU default
    # is exact erf.

    # ---- encoder layer: pre-LN MHSA, heads stacked along sublanes ----
    hn = _layernorm(feats, ln1_g, ln1_b)
    qkv = jnp.dot(hn.astype(bf16), wqkv, preferred_element_type=f32) + bqkv  # (BS,3H)

    def stack_heads(base):                          # -> (STACK, D_HEAD)
        return jnp.concatenate(
            [qkv[:, base + hd * D_HEAD: base + (hd + 1) * D_HEAD]
             for hd in range(N_HEADS)], axis=0)
    q64 = stack_heads(0).astype(bf16)
    k64 = stack_heads(H).astype(bf16)
    v64 = stack_heads(2 * H).astype(bf16)

    # 1/sqrt(d_head) already folded into wqkv's Q columns; one wide softmax.
    s = jnp.einsum('qd,kd->qk', q64, k64, preferred_element_type=f32) + mask
    s = s - jnp.max(s, axis=-1, keepdims=True)
    p = jnp.exp(s)
    p = p * pl.reciprocal(jnp.sum(p, axis=-1, keepdims=True), approx=True)
    ctx64 = jnp.dot(p.astype(bf16), v64, preferred_element_type=f32)  # (STACK,D_HEAD)
    ctx = jnp.concatenate([ctx64[hd * BS:(hd + 1) * BS, :]
                           for hd in range(N_HEADS)], axis=1)         # (BS,H)
    attn = jnp.dot(ctx.astype(bf16), wo, preferred_element_type=f32) + bo
    x1 = feats + attn

    # ---- feed-forward ----
    hn2 = _layernorm(x1, ln2_g, ln2_b)
    f = jnp.dot(hn2.astype(bf16), w1, preferred_element_type=f32) + b1
    f = jax.nn.gelu(f)
    f = jnp.dot(f.astype(bf16), w2, preferred_element_type=f32) + b2
    hidden = x1 + f                                                   # (BS,H)

    # ---- GlobalAvgPool over frames (as a matmul) + Linear head (lane-padded) ----
    pooled = jnp.dot(poolm.astype(bf16), hidden.astype(bf16),
                     preferred_element_type=f32)                      # (B,H)
    out_ref[...] = jnp.dot(pooled.astype(bf16), head_w,
                           preferred_element_type=f32) + head_b


# ------------------------------ wrapper ---------------------------------------
def extract_windows(x):
    # glue: S overlapping raw-audio windows per batch element (bf16, ~12 KB)
    x_pad = jnp.pad(x, ((0, 0), (HALF, HALF)))                     # (B, T_IN+2*HALF)
    idx = ORIG * FRAME * jnp.arange(S)[:, None] + jnp.arange(WIN)[None, :]
    wins = x_pad[:, idx].reshape(BS, WIN)                          # (BS, WIN)
    wins = jnp.pad(wins, ((0, 0), (0, WIN_PAD - WIN)))             # (BS, WIN_PAD)
    return wins.astype(jnp.bfloat16)


def wavlm_classifier_forward(x, params):
    wins = extract_windows(x)
    full = lambda i: (0, 0)
    logits_pad = pl.pallas_call(
        _wavlm_fused_kernel,
        out_shape=jax.ShapeDtypeStruct((B, NUM_CLASSES_PAD), jnp.float32),
        grid=(1,),
        in_specs=[pl.BlockSpec((BS, WIN_PAD), full),               # windows (bf16)
                  pl.BlockSpec((TALL_ROWS, H), full),              # [wproj | w2]
                  pl.BlockSpec((H, ENC_COLS), full),               # [wqkv|wo|w1|head_w]
                  pl.BlockSpec((9, H), full),                      # packed 128-wide params
                  pl.BlockSpec((3, FFN), full),                    # packed wide biases
                  pl.BlockSpec((STACK + B, STACK), full)],         # mask + pool matrix
        out_specs=pl.BlockSpec((B, NUM_CLASSES_PAD), full),
        compiler_params=pltpu.CompilerParams(
            dimension_semantics=("arbitrary",)),
    )(wins, params["tall_w"], params["enc_w"], params["vparams"],
      params["wparams"], params["aux"])
    return logits_pad[:, :NUM_CLASSES]


# --------------------------- parameter init -----------------------------------
def init_params(key):
    ks = jax.random.split(key, 6)
    f32 = jnp.float32
    nrm = lambda k, shape: 0.02 * jax.random.normal(k, shape, dtype=f32)

    filt = make_resample_filter()
    w_feat = nrm(ks[0], (FRAME, H))
    wproj = fold_resample_into_proj(w_feat, filt)                  # (WIN_PAD, H)

    wqkv = nrm(ks[1], (H, 3 * H))
    scale = 1.0 / (D_HEAD ** 0.5)
    # fold the softmax scale into the Q columns (qkv bias is zero, so no bias fix)
    wqkv = jnp.concatenate([wqkv[:, :H] * scale, wqkv[:, H:]], axis=1)
    wo = nrm(ks[2], (H, H))
    w1 = nrm(ks[3], (H, FFN))
    w2 = nrm(ks[4], (FFN, H))
    head_w = jnp.pad(nrm(ks[5], (H, NUM_CLASSES)),
                     ((0, 0), (0, NUM_CLASSES_PAD - NUM_CLASSES)))

    # packed weight slabs (bf16 MXU operands, one DMA each)
    tall_w = jnp.concatenate([wproj, w2], axis=0).astype(jnp.bfloat16)          # (896,128)
    enc_w = jnp.concatenate([wqkv, wo, w1, head_w], axis=1).astype(jnp.bfloat16)  # (128,1280)

    # packed 128-wide f32 params: bproj,lnp_g,lnp_b,ln1_g,ln1_b,bo,ln2_g,ln2_b,b2
    z = jnp.zeros((1, H), f32)
    o = jnp.ones((1, H), f32)
    vparams = jnp.concatenate([z, o, z, o, z, z, o, z, z], axis=0)              # (9,128)

    # packed wide biases: bqkv(384) | b1(512) | head_b(256), padded to 512 lanes
    bqkv = jnp.zeros((3 * H,), f32)
    b1 = jnp.zeros((FFN,), f32)
    head_b = jnp.zeros((NUM_CLASSES_PAD,), f32)
    wparams = jnp.stack([jnp.pad(bqkv, (0, FFN - 3 * H)),
                         b1,
                         jnp.pad(head_b, (0, FFN - NUM_CLASSES_PAD))], axis=0)  # (3,512)

    # aux slab: combined head+batch block-diagonal mask (stacked-head rows are
    # ordered head-major: row = head*BS + flat_frame) + mean-pooling matrix.
    r = jnp.arange(STACK)
    same_head = (r[:, None] // BS) == (r[None, :] // BS)
    same_batch = ((r[:, None] % BS) // S) == ((r[None, :] % BS) // S)
    mask = jnp.where(same_head & same_batch, 0.0, -1e30).astype(f32)            # (64,64)
    pool = ((jnp.arange(BS)[None, :] // S) ==
            jnp.arange(B)[:, None]).astype(f32) / S                             # (B,BS)
    aux = jnp.concatenate([mask, jnp.pad(pool, ((0, 0), (0, STACK - BS)))],
                          axis=0)                                               # (66,64)

    return {"tall_w": tall_w, "enc_w": enc_w, "vparams": vparams,
            "wparams": wparams, "aux": aux}


# --------------------------------- main ----------------------------------------
if __name__ == "__main__":
    key = jax.random.PRNGKey(0)
    k_in, k_par = jax.random.split(key)
    x = jax.random.normal(k_in, (B, T_IN), dtype=jnp.float32)      # raw 32 kHz audio
    params = init_params(k_par)

    fwd = jax.jit(wavlm_classifier_forward)
    logits = fwd(x, params)
    jax.block_until_ready(logits)

    assert logits.shape == (B, NUM_CLASSES), logits.shape
    assert logits.dtype == jnp.float32
    assert bool(jnp.all(jnp.isfinite(logits)))
    print("KERNEL_OK")
</pallas_src>

<mosaic_0001>
module attributes {stable_mosaic.version = 11 : i64} {
  func.func @_wavlm_fused_kernel(%arg0: i32, %arg1: memref<16x384xbf16, #tpu.memory_space<vmem>>, %arg2: memref<896x128xbf16, #tpu.memory_space<vmem>>, %arg3: memref<128x1280xbf16, #tpu.memory_space<vmem>>, %arg4: memref<9x128xf32, #tpu.memory_space<vmem>>, %arg5: memref<3x512xf32, #tpu.memory_space<vmem>>, %arg6: memref<66x64xf32, #tpu.memory_space<vmem>>, %arg7: memref<2x256xf32, #tpu.memory_space<vmem>>) attributes {dimension_semantics = [#tpu.dimension_semantics<arbitrary>], iteration_bounds = array<i64: 1>, scalar_prefetch = 0 : i64, scratch_operands = 0 : i64, tpu.core_type = #tpu.core_type<tc>, window_params = [{pipeline_mode = #tpu.pipeline_mode<synchronous>, transform_indices = @transform_0, window_bounds = array<i64: 16, 384>}, {pipeline_mode = #tpu.pipeline_mode<synchronous>, transform_indices = @transform_1, window_bounds = array<i64: 896, 128>}, {pipeline_mode = #tpu.pipeline_mode<synchronous>, transform_indices = @transform_2, window_bounds = array<i64: 128, 1280>}, {pipeline_mode = #tpu.pipeline_mode<synchronous>, transform_indices = @transform_3, window_bounds = array<i64: 9, 128>}, {pipeline_mode = #tpu.pipeline_mode<synchronous>, transform_indices = @transform_4, window_bounds = array<i64: 3, 512>}, {pipeline_mode = #tpu.pipeline_mode<synchronous>, transform_indices = @transform_5, window_bounds = array<i64: 66, 64>}, {pipeline_mode = #tpu.pipeline_mode<synchronous>, transform_indices = @transform_6, window_bounds = array<i64: 2, 256>}]} {
    %c0 = arith.constant 0 : index
    %c0_0 = arith.constant 0 : index
    %0 = vector.load %arg4[%c0, %c0_0] : memref<9x128xf32, #tpu.memory_space<vmem>>, vector<1x128xf32>
    %c1 = arith.constant 1 : index
    %c0_1 = arith.constant 0 : index
    %1 = vector.load %arg4[%c1, %c0_1] : memref<9x128xf32, #tpu.memory_space<vmem>>, vector<1x128xf32>
    %c2 = arith.constant 2 : index
    %c0_2 = arith.constant 0 : index
    %2 = vector.load %arg4[%c2, %c0_2] : memref<9x128xf32, #tpu.memory_space<vmem>>, vector<1x128xf32>
    %c3 = arith.constant 3 : index
    %c0_3 = arith.constant 0 : index
    %3 = vector.load %arg4[%c3, %c0_3] : memref<9x128xf32, #tpu.memory_space<vmem>>, vector<1x128xf32>
    %c4 = arith.constant 4 : index
    %c0_4 = arith.constant 0 : index
    %4 = vector.load %arg4[%c4, %c0_4] : memref<9x128xf32, #tpu.memory_space<vmem>>, vector<1x128xf32>
    %c5 = arith.constant 5 : index
    %c0_5 = arith.constant 0 : index
    %5 = vector.load %arg4[%c5, %c0_5] : memref<9x128xf32, #tpu.memory_space<vmem>>, vector<1x128xf32>
    %c6 = arith.constant 6 : index
    %c0_6 = arith.constant 0 : index
    %6 = vector.load %arg4[%c6, %c0_6] : memref<9x128xf32, #tpu.memory_space<vmem>>, vector<1x128xf32>
    %c7 = arith.constant 7 : index
    %c0_7 = arith.constant 0 : index
    %7 = vector.load %arg4[%c7, %c0_7] : memref<9x128xf32, #tpu.memory_space<vmem>>, vector<1x128xf32>
    %c8 = arith.constant 8 : index
    %c0_8 = arith.constant 0 : index
    %8 = vector.load %arg4[%c8, %c0_8] : memref<9x128xf32, #tpu.memory_space<vmem>>, vector<1x128xf32>
    %c0_9 = arith.constant 0 : index
    %c0_10 = arith.constant 0 : index
    %9 = vector.load %arg5[%c0_9, %c0_10] : memref<3x512xf32, #tpu.memory_space<vmem>>, vector<1x384xf32>
    %c1_11 = arith.constant 1 : index
    %c0_12 = arith.constant 0 : index
    %10 = vector.load %arg5[%c1_11, %c0_12] : memref<3x512xf32, #tpu.memory_space<vmem>>, vector<1x512xf32>
    %c2_13 = arith.constant 2 : index
    %c0_14 = arith.constant 0 : index
    %11 = vector.load %arg5[%c2_13, %c0_14] : memref<3x512xf32, #tpu.memory_space<vmem>>, vector<1x256xf32>
    %c0_15 = arith.constant 0 : index
    %c0_16 = arith.constant 0 : index
    %12 = vector.load %arg6[%c0_15, %c0_16] : memref<66x64xf32, #tpu.memory_space<vmem>>, vector<64x64xf32>
    %c64 = arith.constant 64 : index
    %c0_17 = arith.constant 0 : index
    %13 = vector.load %arg6[%c64, %c0_17] : memref<66x64xf32, #tpu.memory_space<vmem>>, vector<2x16xf32>
    %c0_18 = arith.constant 0 : index
    %c0_19 = arith.constant 0 : index
    %14 = vector.load %arg2[%c0_18, %c0_19] : memref<896x128xbf16, #tpu.memory_space<vmem>>, vector<384x128xbf16>
    %c384 = arith.constant 384 : index
    %c0_20 = arith.constant 0 : index
    %15 = vector.load %arg2[%c384, %c0_20] : memref<896x128xbf16, #tpu.memory_space<vmem>>, vector<512x128xbf16>
    %c0_21 = arith.constant 0 : index
    %c0_22 = arith.constant 0 : index
    %16 = vector.load %arg3[%c0_21, %c0_22] : memref<128x1280xbf16, #tpu.memory_space<vmem>>, vector<128x384xbf16>
    %c0_23 = arith.constant 0 : index
    %c384_24 = arith.constant 384 : index
    %17 = vector.load %arg3[%c0_23, %c384_24] : memref<128x1280xbf16, #tpu.memory_space<vmem>>, vector<128x128xbf16>
    %c0_25 = arith.constant 0 : index
    %c512 = arith.constant 512 : index
    %18 = vector.load %arg3[%c0_25, %c512] : memref<128x1280xbf16, #tpu.memory_space<vmem>>, vector<128x512xbf16>
    %c0_26 = arith.constant 0 : index
    %c1024 = arith.constant 1024 : index
    %19 = vector.load %arg3[%c0_26, %c1024] : memref<128x1280xbf16, #tpu.memory_space<vmem>>, vector<128x256xbf16>
    %c0_27 = arith.constant 0 : index
    %c0_28 = arith.constant 0 : index
    %20 = vector.load %arg1[%c0_27, %c0_28] : memref<16x384xbf16, #tpu.memory_space<vmem>>, vector<16x384xbf16>
    %cst = arith.constant dense<0.000000e+00> : vector<16x128xf32>
    %21 = tpu.matmul %20, %14, %cst {dimension_numbers = #tpu.dot_dimension_numbers<[1], [0], [0], [1], [0, 0, 1, 1], [], []>} : vector<16x384xbf16>, vector<384x128xbf16>, vector<16x128xf32> -> vector<16x128xf32>
    %22 = vector.broadcast %0 : vector<1x128xf32> to vector<16x128xf32>
    %23 = arith.addf %21, %22 : vector<16x128xf32>
    %cst_29 = arith.constant dense<0.000000e+00> : vector<16xf32>
    %24 = vector.multi_reduction <add>, %23, %cst_29 [1] : vector<16x128xf32> to vector<16xf32>
    %25 = vector.shape_cast %24 : vector<16xf32> to vector<16x1xf32>
    %cst_30 = arith.constant 1.280000e+02 : f32
    %26 = vector.broadcast %cst_30 : f32 to vector<16x1xf32>
    %27 = arith.divf %25, %26 : vector<16x1xf32>
    %28 = vector.broadcast %27 : vector<16x1xf32> to vector<16x128xf32>
    %29 = arith.subf %23, %28 : vector<16x128xf32>
    %30 = arith.mulf %29, %29 : vector<16x128xf32>
    %cst_31 = arith.constant dense<0.000000e+00> : vector<16xf32>
    %31 = vector.multi_reduction <add>, %30, %cst_31 [1] : vector<16x128xf32> to vector<16xf32>
    %32 = vector.shape_cast %31 : vector<16xf32> to vector<16x1xf32>
    %cst_32 = arith.constant 1.280000e+02 : f32
    %33 = vector.broadcast %cst_32 : f32 to vector<16x1xf32>
    %34 = arith.divf %32, %33 : vector<16x1xf32>
    %35 = vector.broadcast %27 : vector<16x1xf32> to vector<16x128xf32>
    %36 = arith.subf %23, %35 : vector<16x128xf32>
    %cst_33 = arith.constant 9.99999974E-6 : f32
    %37 = vector.broadcast %cst_33 : f32 to vector<16x1xf32>
    %38 = arith.addf %34, %37 : vector<16x1xf32>
    %39 = math.rsqrt %38 : vector<16x1xf32>
    %40 = vector.broadcast %39 : vector<16x1xf32> to vector<16x128xf32>
    %41 = arith.mulf %36, %40 : vector<16x128xf32>
    %42 = vector.broadcast %1 : vector<1x128xf32> to vector<16x128xf32>
    %43 = arith.mulf %41, %42 : vector<16x128xf32>
    %44 = vector.broadcast %2 : vector<1x128xf32> to vector<16x128xf32>
    %45 = arith.addf %43, %44 : vector<16x128xf32>
    %46 = arith.mulf %45, %45 : vector<16x128xf32>
    %47 = arith.mulf %45, %46 : vector<16x128xf32>
    %cst_34 = arith.constant 4.471500e-02 : f32
    %48 = vector.broadcast %cst_34 : f32 to vector<16x128xf32>
    %49 = arith.mulf %48, %47 : vector<16x128xf32>
    %50 = arith.addf %45, %49 : vector<16x128xf32>
    %cst_35 = arith.constant 0.797884583 : f32
    %51 = vector.broadcast %cst_35 : f32 to vector<16x128xf32>
    %52 = arith.mulf %51, %50 : vector<16x128xf32>
    %53 = math.tanh %52 : vector<16x128xf32>
    %cst_36 = arith.constant 1.000000e+00 : f32
    %54 = vector.broadcast %cst_36 : f32 to vector<16x128xf32>
    %55 = arith.addf %54, %53 : vector<16x128xf32>
    %cst_37 = arith.constant 5.000000e-01 : f32
    %56 = vector.broadcast %cst_37 : f32 to vector<16x128xf32>
    %57 = arith.mulf %56, %55 : vector<16x128xf32>
    %58 = arith.mulf %45, %57 : vector<16x128xf32>
    %cst_38 = arith.constant dense<0.000000e+00> : vector<16xf32>
    %59 = vector.multi_reduction <add>, %58, %cst_38 [1] : vector<16x128xf32> to vector<16xf32>
    %60 = vector.shape_cast %59 : vector<16xf32> to vector<16x1xf32>
    %cst_39 = arith.constant 1.280000e+02 : f32
    %61 = vector.broadcast %cst_39 : f32 to vector<16x1xf32>
    %62 = arith.divf %60, %61 : vector<16x1xf32>
    %63 = vector.broadcast %62 : vector<16x1xf32> to vector<16x128xf32>
    %64 = arith.subf %58, %63 : vector<16x128xf32>
    %65 = arith.mulf %64, %64 : vector<16x128xf32>
    %cst_40 = arith.constant dense<0.000000e+00> : vector<16xf32>
    %66 = vector.multi_reduction <add>, %65, %cst_40 [1] : vector<16x128xf32> to vector<16xf32>
    %67 = vector.shape_cast %66 : vector<16xf32> to vector<16x1xf32>
    %cst_41 = arith.constant 1.280000e+02 : f32
    %68 = vector.broadcast %cst_41 : f32 to vector<16x1xf32>
    %69 = arith.divf %67, %68 : vector<16x1xf32>
    %70 = vector.broadcast %62 : vector<16x1xf32> to vector<16x128xf32>
    %71 = arith.subf %58, %70 : vector<16x128xf32>
    %cst_42 = arith.constant 9.99999974E-6 : f32
    %72 = vector.broadcast %cst_42 : f32 to vector<16x1xf32>
    %73 = arith.addf %69, %72 : vector<16x1xf32>
    %74 = math.rsqrt %73 : vector<16x1xf32>
    %75 = vector.broadcast %74 : vector<16x1xf32> to vector<16x128xf32>
    %76 = arith.mulf %71, %75 : vector<16x128xf32>
    %77 = vector.broadcast %3 : vector<1x128xf32> to vector<16x128xf32>
    %78 = arith.mulf %76, %77 : vector<16x128xf32>
    %79 = vector.broadcast %4 : vector<1x128xf32> to vector<16x128xf32>
    %80 = arith.addf %78, %79 : vector<16x128xf32>
    %81 = arith.truncf %80 : vector<16x128xf32> to vector<16x128xbf16>
    %cst_43 = arith.constant dense<0.000000e+00> : vector<16x384xf32>
    %82 = tpu.matmul %81, %16, %cst_43 {dimension_numbers = #tpu.dot_dimension_numbers<[1], [0], [0], [1], [0, 0, 1, 1], [], []>} : vector<16x128xbf16>, vector<128x384xbf16>, vector<16x384xf32> -> vector<16x384xf32>
    %83 = vector.broadcast %9 : vector<1x384xf32> to vector<16x384xf32>
    %84 = arith.addf %82, %83 : vector<16x384xf32>
    %85 = vector.extract_strided_slice %84 {offsets = [0, 0], sizes = [16, 32], strides = [1, 1]} : vector<16x384xf32> to vector<16x32xf32>
    %86 = vector.extract_strided_slice %84 {offsets = [0, 32], sizes = [16, 32], strides = [1, 1]} : vector<16x384xf32> to vector<16x32xf32>
    %87 = vector.extract_strided_slice %84 {offsets = [0, 64], sizes = [16, 32], strides = [1, 1]} : vector<16x384xf32> to vector<16x32xf32>
    %88 = vector.extract_strided_slice %84 {offsets = [0, 96], sizes = [16, 32], strides = [1, 1]} : vector<16x384xf32> to vector<16x32xf32>
    %89 = tpu.concatenate %85, %86, %87, %88 in 0 : vector<16x32xf32>, vector<16x32xf32>, vector<16x32xf32>, vector<16x32xf32> -> vector<64x32xf32>
    %90 = arith.truncf %89 : vector<64x32xf32> to vector<64x32xbf16>
    %91 = vector.extract_strided_slice %84 {offsets = [0, 128], sizes = [16, 32], strides = [1, 1]} : vector<16x384xf32> to vector<16x32xf32>
    %92 = vector.extract_strided_slice %84 {offsets = [0, 160], sizes = [16, 32], strides = [1, 1]} : vector<16x384xf32> to vector<16x32xf32>
    %93 = vector.extract_strided_slice %84 {offsets = [0, 192], sizes = [16, 32], strides = [1, 1]} : vector<16x384xf32> to vector<16x32xf32>
    %94 = vector.extract_strided_slice %84 {offsets = [0, 224], sizes = [16, 32], strides = [1, 1]} : vector<16x384xf32> to vector<16x32xf32>
    %95 = tpu.concatenate %91, %92, %93, %94 in 0 : vector<16x32xf32>, vector<16x32xf32>, vector<16x32xf32>, vector<16x32xf32> -> vector<64x32xf32>
    %96 = arith.truncf %95 : vector<64x32xf32> to vector<64x32xbf16>
    %97 = vector.extract_strided_slice %84 {offsets = [0, 256], sizes = [16, 32], strides = [1, 1]} : vector<16x384xf32> to vector<16x32xf32>
    %98 = vector.extract_strided_slice %84 {offsets = [0, 288], sizes = [16, 32], strides = [1, 1]} : vector<16x384xf32> to vector<16x32xf32>
    %99 = vector.extract_strided_slice %84 {offsets = [0, 320], sizes = [16, 32], strides = [1, 1]} : vector<16x384xf32> to vector<16x32xf32>
    %100 = vector.extract_strided_slice %84 {offsets = [0, 352], sizes = [16, 32], strides = [1, 1]} : vector<16x384xf32> to vector<16x32xf32>
    %101 = tpu.concatenate %97, %98, %99, %100 in 0 : vector<16x32xf32>, vector<16x32xf32>, vector<16x32xf32>, vector<16x32xf32> -> vector<64x32xf32>
    %102 = arith.truncf %101 : vector<64x32xf32> to vector<64x32xbf16>
    "tpu.trace_start"() <{level = 10 : i32, message = "qd,kd->qk"}> : () -> ()
    %cst_44 = arith.constant dense<0.000000e+00> : vector<64x64xf32>
    %103 = tpu.matmul %90, %96, %cst_44 {dimension_numbers = #tpu.dot_dimension_numbers<[1], [1], [0], [0], [0, 0, 1, 0], [], []>} : vector<64x32xbf16>, vector<64x32xbf16>, vector<64x64xf32> -> vector<64x64xf32>
    "tpu.trace_stop"() : () -> ()
    %104 = arith.addf %103, %12 : vector<64x64xf32>
    %cst_45 = arith.constant dense<0xFF800000> : vector<64xf32>
    %105 = vector.multi_reduction <maximumf>, %104, %cst_45 [1] : vector<64x64xf32> to vector<64xf32>
    %106 = vector.shape_cast %105 : vector<64xf32> to vector<64x1xf32>
    %107 = vector.broadcast %106 : vector<64x1xf32> to vector<64x64xf32>
    %108 = arith.subf %104, %107 : vector<64x64xf32>
    %109 = math.exp %108 : vector<64x64xf32>
    %cst_46 = arith.constant dense<0.000000e+00> : vector<64xf32>
    %110 = vector.multi_reduction <add>, %109, %cst_46 [1] : vector<64x64xf32> to vector<64xf32>
    %111 = vector.shape_cast %110 : vector<64xf32> to vector<64x1xf32>
    %112 = tpu.reciprocal %111 {approx = true} : vector<64x1xf32> -> vector<64x1xf32>
    %113 = vector.broadcast %112 : vector<64x1xf32> to vector<64x64xf32>
    %114 = arith.mulf %109, %113 : vector<64x64xf32>
    %115 = arith.truncf %114 : vector<64x64xf32> to vector<64x64xbf16>
    %cst_47 = arith.constant dense<0.000000e+00> : vector<64x32xf32>
    %116 = tpu.matmul %115, %102, %cst_47 {dimension_numbers = #tpu.dot_dimension_numbers<[1], [0], [0], [1], [0, 0, 1, 1], [], []>} : vector<64x64xbf16>, vector<64x32xbf16>, vector<64x32xf32> -> vector<64x32xf32>
    %117 = vector.extract_strided_slice %116 {offsets = [0, 0], sizes = [16, 32], strides = [1, 1]} : vector<64x32xf32> to vector<16x32xf32>
    %118 = vector.extract_strided_slice %116 {offsets = [16, 0], sizes = [16, 32], strides = [1, 1]} : vector<64x32xf32> to vector<16x32xf32>
    %119 = vector.extract_strided_slice %116 {offsets = [32, 0], sizes = [16, 32], strides = [1, 1]} : vector<64x32xf32> to vector<16x32xf32>
    %120 = vector.extract_strided_slice %116 {offsets = [48, 0], sizes = [16, 32], strides = [1, 1]} : vector<64x32xf32> to vector<16x32xf32>
    %121 = tpu.concatenate %117, %118, %119, %120 in 1 : vector<16x32xf32>, vector<16x32xf32>, vector<16x32xf32>, vector<16x32xf32> -> vector<16x128xf32>
    %122 = arith.truncf %121 : vector<16x128xf32> to vector<16x128xbf16>
    %cst_48 = arith.constant dense<0.000000e+00> : vector<16x128xf32>
    %123 = tpu.matmul %122, %17, %cst_48 {dimension_numbers = #tpu.dot_dimension_numbers<[1], [0], [0], [1], [0, 0, 1, 1], [], []>} : vector<16x128xbf16>, vector<128x128xbf16>, vector<16x128xf32> -> vector<16x128xf32>
    %124 = vector.broadcast %5 : vector<1x128xf32> to vector<16x128xf32>
    %125 = arith.addf %123, %124 : vector<16x128xf32>
    %126 = arith.addf %58, %125 : vector<16x128xf32>
    %cst_49 = arith.constant dense<0.000000e+00> : vector<16xf32>
    %127 = vector.multi_reduction <add>, %126, %cst_49 [1] : vector<16x128xf32> to vector<16xf32>
    %128 = vector.shape_cast %127 : vector<16xf32> to vector<16x1xf32>
    %cst_50 = arith.constant 1.280000e+02 : f32
    %129 = vector.broadcast %cst_50 : f32 to vector<16x1xf32>
    %130 = arith.divf %128, %129 : vector<16x1xf32>
    %131 = vector.broadcast %130 : vector<16x1xf32> to vector<16x128xf32>
    %132 = arith.subf %126, %131 : vector<16x128xf32>
    %133 = arith.mulf %132, %132 : vector<16x128xf32>
    %cst_51 = arith.constant dense<0.000000e+00> : vector<16xf32>
    %134 = vector.multi_reduction <add>, %133, %cst_51 [1] : vector<16x128xf32> to vector<16xf32>
    %135 = vector.shape_cast %134 : vector<16xf32> to vector<16x1xf32>
    %cst_52 = arith.constant 1.280000e+02 : f32
    %136 = vector.broadcast %cst_52 : f32 to vector<16x1xf32>
    %137 = arith.divf %135, %136 : vector<16x1xf32>
    %138 = vector.broadcast %130 : vector<16x1xf32> to vector<16x128xf32>
    %139 = arith.subf %126, %138 : vector<16x128xf32>
    %cst_53 = arith.constant 9.99999974E-6 : f32
    %140 = vector.broadcast %cst_53 : f32 to vector<16x1xf32>
    %141 = arith.addf %137, %140 : vector<16x1xf32>
    %142 = math.rsqrt %141 : vector<16x1xf32>
    %143 = vector.broadcast %142 : vector<16x1xf32> to vector<16x128xf32>
    %144 = arith.mulf %139, %143 : vector<16x128xf32>
    %145 = vector.broadcast %6 : vector<1x128xf32> to vector<16x128xf32>
    %146 = arith.mulf %144, %145 : vector<16x128xf32>
    %147 = vector.broadcast %7 : vector<1x128xf32> to vector<16x128xf32>
    %148 = arith.addf %146, %147 : vector<16x128xf32>
    %149 = arith.truncf %148 : vector<16x128xf32> to vector<16x128xbf16>
    %cst_54 = arith.constant dense<0.000000e+00> : vector<16x512xf32>
    %150 = tpu.matmul %149, %18, %cst_54 {dimension_numbers = #tpu.dot_dimension_numbers<[1], [0], [0], [1], [0, 0, 1, 1], [], []>} : vector<16x128xbf16>, vector<128x512xbf16>, vector<16x512xf32> -> vector<16x512xf32>
    %151 = vector.broadcast %10 : vector<1x512xf32> to vector<16x512xf32>
    %152 = arith.addf %150, %151 : vector<16x512xf32>
    %153 = arith.mulf %152, %152 : vector<16x512xf32>
    %154 = arith.mulf %152, %153 : vector<16x512xf32>
    %cst_55 = arith.constant 4.471500e-02 : f32
    %155 = vector.broadcast %cst_55 : f32 to vector<16x512xf32>
    %156 = arith.mulf %155, %154 : vector<16x512xf32>
    %157 = arith.addf %152, %156 : vector<16x512xf32>
    %cst_56 = arith.constant 0.797884583 : f32
    %158 = vector.broadcast %cst_56 : f32 to vector<16x512xf32>
    %159 = arith.mulf %158, %157 : vector<16x512xf32>
    %160 = math.tanh %159 : vector<16x512xf32>
    %cst_57 = arith.constant 1.000000e+00 : f32
    %161 = vector.broadcast %cst_57 : f32 to vector<16x512xf32>
    %162 = arith.addf %161, %160 : vector<16x512xf32>
    %cst_58 = arith.constant 5.000000e-01 : f32
    %163 = vector.broadcast %cst_58 : f32 to vector<16x512xf32>
    %164 = arith.mulf %163, %162 : vector<16x512xf32>
    %165 = arith.mulf %152, %164 : vector<16x512xf32>
    %166 = arith.truncf %165 : vector<16x512xf32> to vector<16x512xbf16>
    %cst_59 = arith.constant dense<0.000000e+00> : vector<16x128xf32>
    %167 = tpu.matmul %166, %15, %cst_59 {dimension_numbers = #tpu.dot_dimension_numbers<[1], [0], [0], [1], [0, 0, 1, 1], [], []>} : vector<16x512xbf16>, vector<512x128xbf16>, vector<16x128xf32> -> vector<16x128xf32>
    %168 = vector.broadcast %8 : vector<1x128xf32> to vector<16x128xf32>
    %169 = arith.addf %167, %168 : vector<16x128xf32>
    %170 = arith.addf %126, %169 : vector<16x128xf32>
    %171 = arith.truncf %13 : vector<2x16xf32> to vector<2x16xbf16>
    %172 = arith.truncf %170 : vector<16x128xf32> to vector<16x128xbf16>
    %cst_60 = arith.constant dense<0.000000e+00> : vector<2x128xf32>
    %173 = tpu.matmul %171, %172, %cst_60 {dimension_numbers = #tpu.dot_dimension_numbers<[1], [0], [0], [1], [0, 0, 1, 1], [], []>} : vector<2x16xbf16>, vector<16x128xbf16>, vector<2x128xf32> -> vector<2x128xf32>
    %174 = arith.truncf %173 : vector<2x128xf32> to vector<2x128xbf16>
    %cst_61 = arith.constant dense<0.000000e+00> : vector<2x256xf32>
    %175 = tpu.matmul %174, %19, %cst_61 {dimension_numbers = #tpu.dot_dimension_numbers<[1], [0], [0], [1], [0, 0, 1, 1], [], []>} : vector<2x128xbf16>, vector<128x256xbf16>, vector<2x256xf32> -> vector<2x256xf32>
    %176 = vector.broadcast %11 : vector<1x256xf32> to vector<2x256xf32>
    %177 = arith.addf %175, %176 : vector<2x256xf32>
    %c0_62 = arith.constant 0 : index
    %c0_63 = arith.constant 0 : index
    %178 = vector.load %arg7[%c0_62, %c0_63] : memref<2x256xf32, #tpu.memory_space<vmem>>, vector<2x256xf32>
    tpu.vector_store %arg7[%c0_62, %c0_63], %177 {strides = array<i32>} : memref<2x256xf32, #tpu.memory_space<vmem>>, vector<2x256xf32>,
    return
  }
  func.func @transform_0(%arg0: i32) -> (i32, i32) {
    %c0_i32 = arith.constant 0 : i32
    %c0_i32_0 = arith.constant 0 : i32
    %c0_i32_1 = arith.constant 0 : i32
    return %c0_i32, %c0_i32_0 : i32, i32
  }
  func.func @transform_1(%arg0: i32) -> (i32, i32) {
    %c0_i32 = arith.constant 0 : i32
    %c0_i32_0 = arith.constant 0 : i32
    %c0_i32_1 = arith.constant 0 : i32
    return %c0_i32, %c0_i32_0 : i32, i32
  }
  func.func @transform_2(%arg0: i32) -> (i32, i32) {
    %c0_i32 = arith.constant 0 : i32
    %c0_i32_0 = arith.constant 0 : i32
    %c0_i32_1 = arith.constant 0 : i32
    return %c0_i32, %c0_i32_0 : i32, i32
  }
  func.func @transform_3(%arg0: i32) -> (i32, i32) {
    %c0_i32 = arith.constant 0 : i32
    %c0_i32_0 = arith.constant 0 : i32
    %c0_i32_1 = arith.constant 0 : i32
    return %c0_i32, %c0_i32_0 : i32, i32
  }
  func.func @transform_4(%arg0: i32) -> (i32, i32) {
    %c0_i32 = arith.constant 0 : i32
    %c0_i32_0 = arith.constant 0 : i32
    %c0_i32_1 = arith.constant 0 : i32
    return %c0_i32, %c0_i32_0 : i32, i32
  }
  func.func @transform_5(%arg0: i32) -> (i32, i32) {
    %c0_i32 = arith.constant 0 : i32
    %c0_i32_0 = arith.constant 0 : i32
    %c0_i32_1 = arith.constant 0 : i32
    return %c0_i32, %c0_i32_0 : i32, i32
  }
  func.func @transform_6(%arg0: i32) -> (i32, i32) {
    %c0_i32 = arith.constant 0 : i32
    %c0_i32_0 = arith.constant 0 : i32
    %c0_i32_1 = arith.constant 0 : i32
    return %c0_i32, %c0_i32_0 : i32, i32
  }
}

</mosaic_0001>

<bundles_post_ra>
// kernel: wavlm_classifier_forward.1
= control target key start
LH: loop header
LB: loop body
LE: loop exit
PB: predicated region body
PF: predicated region fallthrough
CT: control target
= control target key end

     0   :  { %v2842_v1 = vmov 0.0   ;;  %vm2843_vm0 = vmmov 0   ;;  %s3597_s0 = inlined_call_operand.vmem [shape: bf16[16,384], index: 0, kind: input, shape index: {}]   ;;  %s3598_s1 = inlined_call_operand.vmem [shape: bf16[896,128], index: 1, kind: input, shape index: {}]   ;;  %s3599_s2 = inlined_call_operand.vmem [shape: bf16[128,1280], index: 2, kind: input, shape index: {}]   ;;  %s3600_s3 = inlined_call_operand.vmem [shape: f32[9,128], index: 3, kind: input, shape index: {}]   ;;  %s3601_s4 = inlined_call_operand.vmem [shape: f32[3,512], index: 4, kind: input, shape index: {}]   ;;  %s3602_s5 = inlined_call_operand.vmem [shape: f32[66,64], index: 5, kind: input, shape index: {}]   ;;  %s3603_s6 = inlined_call_operand.hbm [shape: f32[2,256], index: 6, kind: output, shape index: {}]  }
   0x1   :  { %v2584_v0 = vld [vmem:[%s3598_s1 + $0x78] sm:$0xff]   ;;  %2415 = vmatprep.subr.bf16.mxu1 %v2842_v1  ;;  %2431 = vmatprep.mubr.msk.bf16.mxu1 %vm2843_vm0, %v2842_v1  ;;  %v2587_v4 = vld [vmem:[%s3598_s1 + $0x70] sm:$0xff]   ;;  %v2590_v7 = vld [vmem:[%s3598_s1 + $0x68] sm:$0xff]  }
   0x2   :  { %v2585_v2 = vld [vmem:[%s3598_s1 + $0x38] sm:$0xff]   ;;  %2304 = vmatprep.subr.bf16.mxu0 %v2584_v0  ;;  %v2588_v5 = vld [vmem:[%s3598_s1 + $0x30] sm:$0xff]   ;;  %v2591_v8 = vld [vmem:[%s3598_s1 + $0x28] sm:$0xff]  }
   0x3   :  { %v2586_v3 = vld [vmem:[%s3598_s1 + $0xb8] sm:$0xff]   ;;  %2305 = vmatpush3.bf16.msra.mxu0 %v2585_v2  ;;  %v2589_v6 = vld [vmem:[%s3598_s1 + $0xb0] sm:$0xff]   ;;  %v2592_v9 = vld [vmem:[%s3598_s1 + $0xa8] sm:$0xff]  }
   0x4   :  { %2416 = vmatpush3.bf16.msra.mxu1 %v2586_v3  ;;  %2306 = vmatprep.subr.bf16.mxu0 %v2587_v4  ;;  %v2593_v10 = vld [vmem:[%s3598_s1 + $0x60] sm:$0xff]   ;;  %v2596_v13 = vld [vmem:[%s3598_s1 + $0x58] sm:$0xff]   ;;  %v2599_v16 = vld [vmem:[%s3598_s1 + $0x50] sm:$0xff]  }
   0x5   :  { %2417 = vmatprep.subr.bf16.mxu1 %v2842_v1  ;;  %v2594_v11 = vld [vmem:[%s3598_s1 + $0x20] sm:$0xff]   ;;  %v2597_v14 = vld [vmem:[%s3598_s1 + $0x18] sm:$0xff]   ;;  %v2600_v17 = vld [vmem:[%s3598_s1 + $0x10] sm:$0xff]  }
   0x6   :  { %v2595_v12 = vld [vmem:[%s3598_s1 + $0xa0] sm:$0xff]   ;;  %v2598_v15 = vld [vmem:[%s3598_s1 + $0x98] sm:$0xff]   ;;  %v2601_v18 = vld [vmem:[%s3598_s1 + $0x90] sm:$0xff]  }
   0x7   :  { %2307 = vmatpush3.bf16.msra.mxu0 %v2588_v5  ;;  %v2602_v19 = vld [vmem:[%s3598_s1 + $0x48] sm:$0xff]   ;;  %v2605_v22 = vld [vmem:[%s3598_s1 + $0x40] sm:$0xff]  }
   0x8   :  { %2418 = vmatpush3.bf16.msra.mxu1 %v2589_v6  ;;  %2308 = vmatprep.subr.bf16.mxu0 %v2590_v7  ;;  %v2603_v20 = vld [vmem:[%s3598_s1 + $0x8] sm:$0xff]   ;;  %v2606_v23 = vld [vmem:[%s3598_s1] sm:$0xff]  }
   0x9   :  { %2419 = vmatprep.subr.bf16.mxu1 %v2842_v1  ;;  %v2604_v21 = vld [vmem:[%s3598_s1 + $0x88] sm:$0xff]   ;;  %v2610_v24 = vld [vmem:[%s3597_s0 + $0x4] ss:$12 sps:$4 sm:$0xff]  }
   0xa   :  { %v2607_v25 = vld [vmem:[%s3598_s1 + $0x80] sm:$0xff]   ;;  %456 = vmatprep.mubr.bf16.mxu0 %v2610_v24  ;;  %v2611_v27 = vld [vmem:[%s3597_s0 + $0x8] ss:$12 sps:$4 sm:$0xff]  }
   0xb   :  { %2309 = vmatpush3.bf16.msra.mxu0 %v2591_v8  ;;  %v2608_v26 = vld [vmem:[%s3597_s0] ss:$12 sps:$4 sm:$0xff]  }
   0xc   :  { %2420 = vmatpush3.bf16.msra.mxu1 %v2592_v9  ;;  %2310 = vmatprep.subr.bf16.mxu0 %v2593_v10 }
   0xd   :  { %2421 = vmatprep.subr.bf16.mxu1 %v2842_v1 }
   0xf   :  { %2311 = vmatpush3.bf16.msra.mxu0 %v2594_v11 }
  0x10   :  { %2422 = vmatpush3.bf16.msra.mxu1 %v2595_v12  ;;  %2312 = vmatprep.subr.bf16.mxu0 %v2596_v13 }
  0x11   :  { %2423 = vmatprep.subr.bf16.mxu1 %v2842_v1 }
  0x13   :  { %2313 = vmatpush3.bf16.msra.mxu0 %v2597_v14 }
  0x14   :  { %2424 = vmatpush3.bf16.msra.mxu1 %v2598_v15  ;;  %2314 = vmatprep.subr.bf16.mxu0 %v2599_v16 }
  0x15   :  { %2425 = vmatprep.subr.bf16.mxu1 %v2842_v1 }
  0x17   :  { %2315 = vmatpush3.bf16.msra.mxu0 %v2600_v17 }
  0x18   :  { %2426 = vmatpush3.bf16.msra.mxu1 %v2601_v18  ;;  %2316 = vmatprep.subr.bf16.mxu0 %v2602_v19 }
  0x19   :  { %2427 = vmatprep.subr.bf16.mxu1 %v2842_v1 }
  0x1b   :  { %2317 = vmatpush3.bf16.msra.mxu0 %v2603_v20 }
  0x1c   :  { %2428 = vmatpush3.bf16.msra.mxu1 %v2604_v21  ;;  %2318 = vmatprep.subr.bf16.mxu0 %v2605_v22 }
  0x1d   :  { %2429 = vmatprep.subr.bf16.mxu1 %v2842_v1 }
  0x1f   :  { %2319 = vmatpush3.bf16.msra.mxu0 %v2606_v23 }
  0x20   :  { %2430 = vmatpush3.bf16.msra.mxu1 %v2607_v25 }
  0x21   :  { %2435 = vmatprep.subr.bf16.mxu1 %v2842_v1 }
  0x22   :  { %457 = vmatmul.mubr.bf16.vlgmr.msra.gmra.mxu0 %v2608_v26 }
  0x23   :  { %2432 = vmatmul.mubr.bf16.vlgmr.msra.gmra.mxu1 %v2611_v27 }
  0x24   :  { %2451 = vmatprep.mubr.msk.bf16.mxu1 %vm2843_vm0, %v2842_v1 }
  0x25   :  { %11 = vsyncpa [#allocation3], 0  ;;  %v2146_v30 = vld [vmem:[%s3600_s3] ss:$0 sm:$0xff]  ;;  %v2174_v58 = vld [vmem:[%s3600_s3 + $0x1] ss:$0 sm:$0xff] }
  0x26   :  { %v2175_v60 = vld [vmem:[%s3600_s3 + $0x2] ss:$0 sm:$0xff]  ;;  %v2612_v22 = vld [vmem:[%s3599_s2 + $0x230] ss:$40 sps:$4 sm:$0xff]   ;;  %v2614_v23 = vld [vmem:[%s3599_s2 + $0x234] ss:$40 sps:$4 sm:$0xff]  }
  0x27   :  { %v2615_v24 = vld [vmem:[%s3599_s2 + $0x238] ss:$40 sps:$4 sm:$0xff]   ;;  %738 = vmatprep.subr.bf16.mxu0 %v2614_v23  ;;  %vm894_vm1 = vcmask 261120   ;;  %s2845_s12 = smov 64   ;;  %s2846_s13 = smov 32   ;;  %vm984_vm2 = vcmask 523264  }
  0x28   :  { %2436 = vmatpush3.bf16.msra.mxu1 %v2615_v24  ;;  %739 = vmatpush1.bf16.msra.mxu0 %v2612_v22  ;;  %s2847_s14 = smov 96   ;;  %vm1182_vm3 = vcmask 785408   ;;  %vm1941_vm4 = vcmask 130048  }
  0x29   :  { %2437 = vmatprep.subr.bf16.mxu1 %v2842_v1 }
  0xe2   :  { %v2320_v28 = vpop.f32.mrf.mxu0 }
  0xe3   :  { %v499_v29 = vpop.f32.mrf.mxu1 }
  0xe4   :  { %v2321_v31 = vpop.f32.mrf.mxu0 }
  0xe5   :  { %v2322_v32 = vadd.f32 %v2321_v31, %v2320_v28  ;;  %v2433_v33 = vpop.f32.mrf.mxu1 }
  0xe6   :  { %v2323_v34 = vpop.f32.mrf.mxu0  ;;  %v2618_v33 = vld [vmem:[%s3599_s2 + $0x1e4] ss:$40 sps:$4 sm:$0xff]  }
  0xe7   :  { %v459_v35 = vadd.f32 %v2322_v32, %v2146_v30  ;;  %v502_v36 = vpop.f32.mrf.mxu1  ;;  %740 = vmatprep.subr.bf16.mxu0 %v2618_v33 }
  0xe8   :  { %v2324_v37 = vpop.f32.mrf.mxu0 }
  0xe9   :  { %v2325_v38 = vadd.f32 %v2324_v37, %v2323_v34  ;;  %v2434_v39 = vpop.f32.mrf.mxu1  ;;  %v500_v40 = vadd.f32 %v499_v29, %v459_v35  ;;  %v2616_v34 = vld [vmem:[%s3599_s2 + $0x1e0] ss:$40 sps:$4 sm:$0xff]   ;;  %v2620_v37 = vld [vmem:[%s3599_s2 + $0x190] ss:$40 sps:$4 sm:$0xff]  }
  0xea   :  { %v2619_v35 = vld [vmem:[%s3599_s2 + $0x1e8] ss:$40 sps:$4 sm:$0xff]   ;;  %741 = vmatpush1.bf16.msra.mxu0 %v2616_v34 }
  0xeb   :  { %v462_v41 = vadd.f32 %v2325_v38, %v2146_v30  ;;  %506 = vadd.xlane.f32.xlu0 %v500_v40  ;;  %2438 = vmatpush3.bf16.msra.mxu1 %v2619_v35  ;;  %v2623_v38 = vld [vmem:[%s3599_s2 + $0x198] ss:$40 sps:$4 sm:$0xff]  }
  0xec   :  { %2439 = vmatprep.subr.bf16.mxu1 %v2842_v1  ;;  %v2624_v39 = vld [vmem:[%s3599_s2 + $0x140] ss:$40 sps:$4 sm:$0xff]  }
  0xed   :  { %v503_v42 = vadd.f32 %v502_v36, %v462_v41  ;;  %v2622_v36 = vld [vmem:[%s3599_s2 + $0x194] ss:$40 sps:$4 sm:$0xff]   ;;  %v2627_v41 = vld [vmem:[%s3599_s2 + $0x148] ss:$40 sps:$4 sm:$0xff]  }
  0xee   :  { %742 = vmatprep.subr.bf16.mxu0 %v2622_v36 }
  0xef   :  { %508 = vadd.xlane.f32.xlu0 %v503_v42  ;;  %743 = vmatpush1.bf16.msra.mxu0 %v2620_v37 }
  0xf0   :  { %2440 = vmatpush3.bf16.msra.mxu1 %v2623_v38 }
  0xf1   :  { %2441 = vmatprep.subr.bf16.mxu1 %v2842_v1 }
  0xf4   :  { %2442 = vmatpush3.bf16.msra.mxu1 %v2627_v41 }
  0xf5   :  { %2443 = vmatprep.subr.bf16.mxu1 %v2842_v1 }
 0x174   :  { %v507_v43 = vpop.xlane.xlu0 %506 }
 0x175   :  { %v511_v44 = vmul.f32 0.0078125, %v507_v43  ;;  %v2628_v43 = vld [vmem:[%s3599_s2 + $0xf0] ss:$40 sps:$4 sm:$0xff]  }
 0x177   :  { %v513_v45 = vsub.f32 %v500_v40, %v511_v44  ;;  %v2626_v40 = vld [vmem:[%s3599_s2 + $0x144] ss:$40 sps:$4 sm:$0xff]   ;;  %v2631_v44 = vld [vmem:[%s3599_s2 + $0xf8] ss:$40 sps:$4 sm:$0xff]  }
 0x178   :  { %v509_v46 = vpop.xlane.xlu0 %508  ;;  %744 = vmatprep.subr.bf16.mxu0 %v2626_v40  ;;  %2444 = vmatpush3.bf16.msra.mxu1 %v2631_v44 }
 0x179   :  { %v512_v47 = vmul.f32 0.0078125, %v509_v46  ;;  %v515_v48 = vmul.f32 %v513_v45, %v513_v45  ;;  %745 = vmatpush1.bf16.msra.mxu0 %v2624_v39  ;;  %v2844_v46 = vmov 0   ;;  %2445 = vmatprep.subr.bf16.mxu1 %v2842_v1 }
 0x17a   :  { %770 = vmatprep.mubr.bf16.mxu0 %v2844_v46 }
 0x17b   :  { %v514_v49 = vsub.f32 %v503_v42, %v512_v47  ;;  %517 = vadd.xlane.f32.xlu1 %v515_v48  ;;  %v2630_v42 = vld [vmem:[%s3599_s2 + $0xf4] ss:$40 sps:$4 sm:$0xff]   ;;  %v2632_v47 = vld [vmem:[%s3599_s2 + $0xa0] ss:$40 sps:$4 sm:$0xff]  }
 0x17c   :  { %746 = vmatprep.subr.bf16.mxu0 %v2630_v42  ;;  %v2635_v48 = vld [vmem:[%s3599_s2 + $0xa8] ss:$40 sps:$4 sm:$0xff]  }
 0x17d   :  { %v516_v50 = vmul.f32 %v514_v49, %v514_v49  ;;  %747 = vmatpush1.bf16.msra.mxu0 %v2628_v43  ;;  %2446 = vmatpush3.bf16.msra.mxu1 %v2635_v48 }
 0x17e   :  { %2447 = vmatprep.subr.bf16.mxu1 %v2842_v1 }
 0x17f   :  { %519 = vadd.xlane.f32.xlu1 %v516_v50  ;;  %v2636_v50 = vld [vmem:[%s3599_s2 + $0x50] ss:$40 sps:$4 sm:$0xff]  }
 0x204   :  { %v518_v51 = vpop.xlane.xlu1 %517 }
 0x205   :  { %v521_v52 = vmul.f32 0.0078125, %v518_v51  ;;  %v2639_v51 = vld [vmem:[%s3599_s2 + $0x58] ss:$40 sps:$4 sm:$0xff]  }
 0x206   :  { %2448 = vmatpush3.bf16.msra.mxu1 %v2639_v51 }
 0x207   :  { %v523_v53 = vadd.f32 1e-05, %v521_v52  ;;  %v2642_v52 = vld [vmem:[%s3599_s2 + $0x4] ss:$40 sps:$4 sm:$0xff]   ;;  %2449 = vmatprep.subr.bf16.mxu1 %v2842_v1 }
 0x208   :  { %v520_v54 = vpop.xlane.xlu1 %519 }
 0x209   :  { %2756 = vrsqrt.f32 %v523_v53  ;;  %v522_v55 = vmul.f32 0.0078125, %v520_v54  ;;  %v2640_v53 = vld [vmem:[%s3599_s2] ss:$40 sps:$4 sm:$0xff]  }
 0x20a   :  { %v2643_v54 = vld [vmem:[%s3599_s2 + $0x8] ss:$40 sps:$4 sm:$0xff]  }
 0x20b   :  { %v524_v56 = vadd.f32 1e-05, %v522_v55  ;;  %2450 = vmatpush3.bf16.msra.mxu1 %v2643_v54 }
 0x20d   :  { %2758 = vrsqrt.f32 %v524_v56 }
 0x216   :  { %v2757_v57 = vpop.eup %2756 }
 0x217   :  { %v527_v59 = vmul.f32 %v2757_v57, %v513_v45  ;;  %v2634_v45 = vld [vmem:[%s3599_s2 + $0xa4] ss:$40 sps:$4 sm:$0xff]  }
 0x218   :  { %748 = vmatprep.subr.bf16.mxu0 %v2634_v45 }
 0x219   :  { %v533_v61 = vmul.f32 %v2174_v58, %v527_v59  ;;  %749 = vmatpush1.bf16.msra.mxu0 %v2632_v47 }
 0x21a   :  { %v2759_v62 = vpop.eup %2758 }
 0x21b   :  { %v528_v63 = vmul.f32 %v2759_v62, %v514_v49  ;;  %v539_v0 = vadd.f32 %v2175_v60, %v533_v61  ;;  %v2638_v49 = vld [vmem:[%s3599_s2 + $0x54] ss:$40 sps:$4 sm:$0xff]  }
 0x21c   :  { %750 = vmatprep.subr.bf16.mxu0 %v2638_v49 }
 0x21d   :  { %v541_v2 = vmul.f32 %v539_v0, %v539_v0  ;;  %v534_v3 = vmul.f32 %v2174_v58, %v528_v63  ;;  %751 = vmatpush1.bf16.msra.mxu0 %v2636_v50  ;;  %v2176_v63 = vld [vmem:[%s3600_s3 + $0x3] ss:$0 sm:$0xff] }
 0x21e   :  { %752 = vmatprep.subr.bf16.mxu0 %v2642_v52 }
 0x21f   :  { %v543_v4 = vmul.f32 %v541_v2, %v539_v0  ;;  %v540_v5 = vadd.f32 %v2175_v60, %v534_v3 }
 0x221   :  { %v545_v6 = vmul.f32 0.044715, %v543_v4  ;;  %v542_v7 = vmul.f32 %v540_v5, %v540_v5  ;;  %753 = vmatpush1.bf16.msra.mxu0 %v2640_v53  ;;  %v2177_v4 = vld [vmem:[%s3600_s3 + $0x4] ss:$0 sm:$0xff] }
 0x223   :  { %v547_v8 = vadd.f32 %v545_v6, %v539_v0  ;;  %v544_v9 = vmul.f32 %v542_v7, %v540_v5 }
 0x225   :  { %v549_v10 = vmul.f32 0.7978846, %v547_v8  ;;  %v546_v11 = vmul.f32 0.044715, %v544_v9  ;;  %v595_v9 = vlaneseq }
 0x227   :  { %2760 = vtanh.f32 %v549_v10  ;;  %v548_v12 = vadd.f32 %v546_v11, %v540_v5  ;;  %v3091_v10 = vshrl.u32 %v595_v9, 7 }
 0x229   :  { %v550_v13 = vmul.f32 0.7978846, %v548_v12  ;;  %v3094_v11 = vsub.s32 0, %v3091_v10  ;;  %v34_v12 = vld [vmem:[%s3601_s4] ss:$4 sm:$0x7] }
 0x22b   :  { %2762 = vtanh.f32 %v550_v13  ;;  %v605_v13 = vsub.s32 2, %v3091_v10 }
 0x234   :  { %v2761_v14 = vpop.eup %2760 }
 0x235   :  { %v553_v15 = vadd.f32 1.0, %v2761_v14  ;;  %v3101_v14 = vsub.s32 1, %v3091_v10 }
 0x237   :  { %v555_v16 = vmul.f32 0.5, %v553_v15  ;;  %v602_v23 = vrot.slane %v34_v12, %v3101_v14 }
 0x238   :  { %v2763_v17 = vpop.eup %2762 }
 0x239   :  { %v2987_v18 = vmul.f32 %v555_v16, %v539_v0  ;;  %v554_v19 = vadd.f32 1.0, %v2763_v17  ;;  %v598_v17 = vrot.slane %v34_v12, %v3094_v11 }
 0x23b   :  { %559 = vadd.xlane.f32.xlu0 %v2987_v18  ;;  %v556_v20 = vmul.f32 0.5, %v554_v19  ;;  %v606_v19 = vrot.slane %v34_v12, %v605_v13 }
 0x23d   :  { %v2990_v21 = vmul.f32 %v556_v20, %v540_v5 }
 0x23f   :  { %561 = vadd.xlane.f32.xlu1 %v2990_v21 }
 0x2c4   :  { %v560_v25 = vpop.xlane.xlu0 %559 }
 0x2c5   :  { %v563_v26 = vmul.f32 0.0078125, %v560_v25 }
 0x2c7   :  { %v3004_v27 = vsub.f32 %v2987_v18, %v563_v26 }
 0x2c8   :  { %v562_v28 = vpop.xlane.xlu1 %561 }
 0x2c9   :  { %v564_v29 = vmul.f32 0.0078125, %v562_v28  ;;  %v567_v30 = vmul.f32 %v3004_v27, %v3004_v27 }
 0x2cb   :  { %v3009_v31 = vsub.f32 %v2990_v21, %v564_v29  ;;  %569 = vadd.xlane.f32.xlu0 %v567_v30 }
 0x2cd   :  { %v568_v32 = vmul.f32 %v3009_v31, %v3009_v31 }
 0x2cf   :  { %571 = vadd.xlane.f32.xlu1 %v568_v32 }
 0x354   :  { %v570_v55 = vpop.xlane.xlu0 %569 }
 0x355   :  { %v573_v56 = vmul.f32 0.0078125, %v570_v55 }
 0x357   :  { %v575_v57 = vadd.f32 1e-05, %v573_v56 }
 0x358   :  { %v572_v58 = vpop.xlane.xlu1 %571 }
 0x359   :  { %2764 = vrsqrt.f32 %v575_v57  ;;  %v574_v59 = vmul.f32 0.0078125, %v572_v58 }
 0x35b   :  { %v576_v60 = vadd.f32 1e-05, %v574_v59 }
 0x35d   :  { %2766 = vrsqrt.f32 %v576_v60 }
 0x366   :  { %v2765_v61 = vpop.eup %2764 }
 0x367   :  { %v579_v62 = vmul.f32 %v2765_v61, %v3004_v27 }
 0x369   :  { %v585_v3 = vmul.f32 %v2176_v63, %v579_v62 }
 0x36a   :  { %v2767_v0 = vpop.eup %2766 }
 0x36b   :  { %v580_v2 = vmul.f32 %v2767_v0, %v3009_v31  ;;  %v591_v6 = vadd.f32 %v2177_v4, %v585_v3 }
 0x36d   :  { %v586_v5 = vmul.f32 %v2176_v63, %v580_v2 }
 0x36f   :  { %v592_v7 = vadd.f32 %v2177_v4, %v586_v5 }
 0x371   :  { %v593_v8 = vpack.c.bf16 %v592_v7, %v591_v6  ;;  %v39_v7 = vld [vmem:[%s3602_s5] sm:$0xff] }
 0x373   :  { %771 = vmatmul.mubr.bf16.vlgmr.msra.gmra.mxu0 %v593_v8  ;;  %2452 = vmatmul.mubr.bf16.vlgmr.msra.gmra.mxu1 %v593_v8  ;;  %v41_v8 = vld [vmem:[%s3602_s5 + $0x10] sm:$0xff] }
 0x433   :  { %v772_v15 = vpop.f32.mrf.mxu0  ;;  %v815_v16 = vpop.f32.mrf.mxu1 }
 0x434   :  { %v773_v26 = vadd.f32 %v772_v15, %v598_v17  ;;  %v816_v29 = vadd.f32 %v815_v16, %v606_v19  ;;  %v40_v16 = vld [vmem:[%s3602_s5 + $0x8] sm:$0xff] }
 0x435   :  { %v774_v20 = vpop.f32.mrf.mxu0  ;;  %v2453_v22 = vpop.f32.mrf.mxu1 }
 0x436   :  { %v775_v32 = vadd.f32 %v774_v20, %v602_v23  ;;  %v42_v20 = vld [vmem:[%s3602_s5 + $0x18] sm:$0xff] }
 0x437   :  { %v776_v24 = vpop.f32.mrf.mxu0  ;;  %v818_v25 = vpop.f32.mrf.mxu1 }
 0x438   :  { %v777_v27 = vadd.f32 %v776_v24, %v598_v17  ;;  %v819_v28 = vadd.f32 %v818_v25, %v606_v19 }
 0x439   :  { %v778_v30 = vpop.f32.mrf.mxu0  ;;  %v2454_v31 = vpop.f32.mrf.mxu1 }
 0x43a   :  { %v779_v33 = vadd.f32 %v778_v30, %v602_v23  ;;  %v842_v34 = vpack.c.bf16 %v777_v27, %v773_v26  ;;  %v3107_v35 = vpack.i.bf16 %v819_v28, %v816_v29  ;;  %v3110_v38 = vpack.c.bf16 %v819_v28, %v816_v29  ;;  %v43_v29 = vld [vmem:[%s3602_s5 + $0x20] sm:$0xff]  ;;  %v44_v31 = vld [vmem:[%s3602_s5 + $0x28] sm:$0xff] }
 0x43b   :  { %v2544_v39 = vpack.i.bf16 %v777_v27, %v773_v26 }
 0x43c   :  { %2463 = vmatprep.mubr.msk.bf16.mxu0 %vm894_vm1, %v842_v34  ;;  %v2529_v36 = vpack.i.bf16 %v779_v33, %v775_v32  ;;  %v866_v37 = vpack.c.bf16 %v779_v33, %v775_v32  ;;  %v45_v34 = vld [vmem:[%s3602_s5 + $0x30] sm:$0xff] }
 0x43e   :  { %2530 = vrot.lane.b32.xlu1 %v2529_v36, %s2845_s12  ;;  %2525 = vrot.lane.b32.xlu0 %v2529_v36, %s2846_s13  ;;  %v908_v58 = vsel %vm894_vm1, %v866_v37, 0 }
 0x442   :  { %2535 = vrot.lane.b32.xlu1 %v2529_v36, %s2847_s14  ;;  %2545 = vrot.lane.b32.xlu0 %v2544_v39, %s2845_s12  ;;  %v46_v36 = vld [vmem:[%s3602_s5 + $0x38] sm:$0xff] }
 0x446   :  { %2540 = vrot.lane.b32.xlu1 %v2544_v39, %s2847_s14 }
 0x44a   :  { %2550 = vrot.lane.b32.xlu1 %v2544_v39, %s2846_s13 }
 0x4b0   :  { %v2531_v40 = vpop.permute.xlu1 %2530  ;;  %v2526_v41 = vpop.permute.xlu0 %2525 }
 0x4b1   :  { %v2528_v42 = vunpack.i.h.bf16 %v2526_v41  ;;  %v2527_v43 = vunpack.i.l.bf16 %v2526_v41  ;;  %v2533_v44 = vunpack.i.h.bf16 %v2531_v40  ;;  %v2532_v45 = vunpack.i.l.bf16 %v2531_v40 }
 0x4b3   :  { %v869_v47 = vpack.c.bf16 %v2528_v42, %v2527_v43  ;;  %v868_v48 = vpack.c.bf16 %v2533_v44, %v2532_v45 }
 0x4b4   :  { %v2536_v50 = vpop.permute.xlu1 %2535  ;;  %v2546_v57 = vpop.permute.xlu0 %2545 }
 0x4b5   :  { %2513 = vmatprep.subr.msk.bf16.mxu0 %vm894_vm1, %v869_v47  ;;  %v917_v49 = vsel %vm894_vm1, %v869_v47, 0  ;;  %v2538_v51 = vunpack.i.h.bf16 %v2536_v50  ;;  %v2537_v52 = vunpack.i.l.bf16 %v2536_v50  ;;  %v914_v54 = vsel %vm894_vm1, %v868_v48, 0 }
 0x4b6   :  { %2456 = vmatpush3.bf16.xpose.msra.mxu0 %v917_v49  ;;  %v2548_v61 = vunpack.i.h.bf16 %v2546_v57  ;;  %v2547_v62 = vunpack.i.l.bf16 %v2546_v57 }
 0x4b7   :  { %2514 = vmatprep.subr.msk.bf16.mxu0 %vm894_vm1, %v868_v48  ;;  %v867_v53 = vpack.c.bf16 %v2538_v51, %v2537_v52 }
 0x4b8   :  { %v2541_v56 = vpop.permute.xlu1 %2540  ;;  %v844_v0 = vpack.c.bf16 %v2548_v61, %v2547_v62 }
 0x4b9   :  { %v911_v55 = vsel %vm894_vm1, %v867_v53, 0  ;;  %v2543_v59 = vunpack.i.h.bf16 %v2541_v56  ;;  %v2542_v60 = vunpack.i.l.bf16 %v2541_v56 }
 0x4bb   :  { %v843_v63 = vpack.c.bf16 %v2543_v59, %v2542_v60 }
 0x4bc   :  { %v2551_v2 = vpop.permute.xlu1 %2550 }
 0x4bd   :  { %v2553_v3 = vunpack.i.h.bf16 %v2551_v2  ;;  %v2552_v4 = vunpack.i.l.bf16 %v2551_v2 }
 0x4be   :  { %2458 = vmatpush3.bf16.xpose.msra.mxu0 %v914_v54 }
 0x4bf   :  { %2515 = vmatprep.subr.msk.bf16.mxu0 %vm894_vm1, %v867_v53  ;;  %v845_v5 = vpack.c.bf16 %v2553_v3, %v2552_v4 }
 0x4c6   :  { %2460 = vmatpush3.bf16.xpose.msra.mxu0 %v911_v55 }
 0x4c7   :  { %2516 = vmatprep.subr.msk.bf16.mxu0 %vm894_vm1, %v866_v37 }
 0x4ce   :  { %2462 = vmatpush3.bf16.xpose.msra.mxu0 %v908_v58 }
 0x4d5   :  { %2464 = vmatmul.mubr.msk.bf16.vlgmr.msra.gmra.mxu0 %vm894_vm1, %v843_v63 }
 0x4d6   :  { %2467 = vmatprep.mubr.msk.bf16.mxu0 %vm894_vm1, %v844_v0 }
 0x4dd   :  { %2468 = vmatmul.mubr.msk.bf16.gmra.mxu0 %vm894_vm1, %v845_v5 }
 0x4de   :  { %1529 = vmatprep.mubr.bf16.mxu0 %v2844_v46 }
 0x595   :  { %v2465_v6 = vpop.f32.mrf.mxu0 }
 0x596   :  { %v962_v17 = vadd.f32 %v2465_v6, %v41_v8 }
 0x597   :  { %v953_v9 = vpop.f32.mrf.mxu0 }
 0x598   :  { %v954_v12 = vadd.f32 %v953_v9, %v39_v7  ;;  %v991_v27 = vsel %vm984_vm2, %v962_v17, -inf }
 0x599   :  { %v2466_v15 = vpop.f32.mrf.mxu0 }
 0x59a   :  { %v985_v19 = vsel %vm984_vm2, %v954_v12, -inf  ;;  %v965_v25 = vadd.f32 %v2466_v15, %v42_v20 }
 0x59b   :  { %v956_v22 = vpop.f32.mrf.mxu0  ;;  %986 = vmax.xlane.f32.xlu0 %v985_v19 }
 0x59c   :  { %v957_v23 = vadd.f32 %v956_v22, %v40_v16  ;;  %v994_v33 = vsel %vm984_vm2, %v965_v25, -inf }
 0x59d   :  { %v2469_v24 = vpop.f32.mrf.mxu0 }
 0x59e   :  { %v988_v26 = vsel %vm984_vm2, %v957_v23, -inf  ;;  %v978_v40 = vadd.f32 %v2469_v24, %v45_v34 }
 0x59f   :  { %v969_v28 = vpop.f32.mrf.mxu0  ;;  %989 = vmax.xlane.f32.xlu1 %v988_v26  ;;  %992 = vmax.xlane.f32.xlu0 %v991_v27 }
 0x5a0   :  { %v970_v32 = vadd.f32 %v969_v28, %v43_v29  ;;  %v1003_v45 = vsel %vm984_vm2, %v978_v40, -inf }
 0x5a1   :  { %v2470_v30 = vpop.f32.mrf.mxu0 }
 0x5a2   :  { %v981_v41 = vadd.f32 %v2470_v30, %v46_v36  ;;  %v997_v43 = vsel %vm984_vm2, %v970_v32, -inf }
 0x5a3   :  { %v972_v37 = vpop.f32.mrf.mxu0  ;;  %995 = vmax.xlane.f32.xlu0 %v994_v33 }
 0x5a4   :  { %v973_v39 = vadd.f32 %v972_v37, %v44_v31  ;;  %v1006_v44 = vsel %vm984_vm2, %v981_v41, -inf }
 0x5a6   :  { %v1000_v42 = vsel %vm984_vm2, %v973_v39, -inf }
 0x5a7   :  { %1001 = vmax.xlane.f32.xlu1 %v1000_v42  ;;  %998 = vmax.xlane.f32.xlu0 %v997_v43 }
 0x5ab   :  { %1007 = vmax.xlane.f32.xlu1 %v1006_v44  ;;  %1004 = vmax.xlane.f32.xlu0 %v1003_v45 }
 0x624   :  { %v987_v47 = vpop.xlane.xlu0 %986 }
 0x625   :  { %v1009_v48 = vsub.f32 %v954_v12, %v987_v47 }
 0x627   :  { %v1017_v54 = vmul.f32 1.442695, %v1009_v48 }
 0x628   :  { %v990_v49 = vpop.xlane.xlu1 %989  ;;  %v993_v50 = vpop.xlane.xlu0 %992 }
 0x629   :  { %v1011_v51 = vsub.f32 %v962_v17, %v993_v50  ;;  %v1010_v52 = vsub.f32 %v957_v23, %v990_v49 }
 0x62b   :  { %v1021_v53 = vmul.f32 1.442695, %v1011_v51  ;;  %v1019_v57 = vmul.f32 1.442695, %v1010_v52 }
 0x62c   :  { %v996_v55 = vpop.xlane.xlu0 %995 }
 0x62d   :  { %v1012_v56 = vsub.f32 %v965_v25, %v996_v55  ;;  %2768 = vpow2.f32 %v1021_v53 }
 0x62e   :  { %2770 = vpow2.f32 %v1017_v54 }
 0x62f   :  { %v1023_v58 = vmul.f32 1.442695, %v1012_v56 }
 0x630   :  { %v999_v59 = vpop.xlane.xlu0 %998  ;;  %v1002_v19 = vpop.xlane.xlu1 %1001 }
 0x631   :  { %2772 = vpow2.f32 %v1023_v58  ;;  %v1013_v60 = vsub.f32 %v970_v32, %v999_v59  ;;  %v1014_v23 = vsub.f32 %v973_v39, %v1002_v19 }
 0x632   :  { %2774 = vpow2.f32 %v1019_v57 }
 0x633   :  { %v1025_v0 = vmul.f32 1.442695, %v1013_v60  ;;  %v1027_v25 = vmul.f32 1.442695, %v1014_v23 }
 0x634   :  { %v1005_v61 = vpop.xlane.xlu0 %1004  ;;  %v1008_v20 = vpop.xlane.xlu1 %1007 }
 0x635   :  { %v1015_v62 = vsub.f32 %v978_v40, %v1005_v61  ;;  %v1016_v22 = vsub.f32 %v981_v41, %v1008_v20 }
 0x637   :  { %v1029_v63 = vmul.f32 1.442695, %v1015_v62  ;;  %v1031_v24 = vmul.f32 1.442695, %v1016_v22  ;;  %v2650_v22 = vld [vmem:[%s3599_s2 + $0x5c] ss:$40 sps:$4 sm:$0xff]  }
 0x639   :  { %2776 = vpow2.f32 %v1029_v63 }
 0x63a   :  { %v3162_v2 = vpop.eup %2768  ;;  %2778 = vpow2.f32 %v1025_v0 }
 0x63b   :  { %v1039_v3 = vsel %vm984_vm2, %v3162_v2, 0.0  ;;  %v2771_v4 = vpop.eup %2770  ;;  %2780 = vpow2.f32 %v1031_v24 }
 0x63c   :  { %1040 = vadd.xlane.f32.xlu0 %v1039_v3  ;;  %v1033_v8 = vsel %vm984_vm2, %v2771_v4, 0.0  ;;  %2782 = vpow2.f32 %v1027_v25 }
 0x63e   :  { %v3166_v5 = vpop.eup %2772 }
 0x63f   :  { %v1042_v6 = vsel %vm984_vm2, %v3166_v5, 0.0  ;;  %v2775_v7 = vpop.eup %2774 }
 0x640   :  { %1043 = vadd.xlane.f32.xlu1 %v1042_v6  ;;  %1034 = vadd.xlane.f32.xlu0 %v1033_v8  ;;  %v1036_v9 = vsel %vm984_vm2, %v2775_v7, 0.0 }
 0x644   :  { %1037 = vadd.xlane.f32.xlu1 %v1036_v9  ;;  %v2645_v9 = vld [vmem:[%s3599_s2 + $0x1ec] ss:$40 sps:$4 sm:$0xff]  }
 0x646   :  { %v3172_v12 = vpop.eup %2776 }
 0x647   :  { %v1051_v15 = vsel %vm984_vm2, %v3172_v12, 0.0  ;;  %v3176_v16 = vpop.eup %2778 }
 0x648   :  { %1052 = vadd.xlane.f32.xlu0 %v1051_v15  ;;  %v1045_v17 = vsel %vm984_vm2, %v3176_v16, 0.0  ;;  %v3184_v26 = vpop.eup %2780  ;;  %v2647_v15 = vld [vmem:[%s3599_s2 + $0x14c] ss:$40 sps:$4 sm:$0xff]  }
 0x649   :  { %v1054_v27 = vsel %vm984_vm2, %v3184_v26, 0.0  ;;  %v2783_v28 = vpop.eup %2782 }
 0x64a   :  { %v1048_v29 = vsel %vm984_vm2, %v2783_v28, 0.0 }
 0x64c   :  { %1046 = vadd.xlane.f32.xlu0 %v1045_v17  ;;  %v2649_v17 = vld [vmem:[%s3599_s2 + $0xac] ss:$40 sps:$4 sm:$0xff]  }
 0x655   :  { %2560 = vrot.lane.b32.xlu1 %v3107_v35, %s2845_s12 }
 0x662   :  { %2555 = vrot.lane.b32.xlu0 %v3107_v35, %s2846_s13 }
 0x679   :  { %1055 = vadd.xlane.f32.xlu1 %v1054_v27 }
 0x67d   :  { %1049 = vadd.xlane.f32.xlu1 %v1048_v29 }
 0x68e   :  { %2565 = vrot.lane.b32.xlu1 %v3107_v35, %s2847_s14 }
 0x6c5   :  { %v1041_v30 = vpop.xlane.xlu0 %1040 }
 0x6c9   :  { %v1044_v31 = vpop.xlane.xlu1 %1043  ;;  %v1035_v32 = vpop.xlane.xlu0 %1034 }
 0x6ca   :  { %2784 = vrcp.f32 %v1035_v32 }
 0x6cd   :  { %v1038_v33 = vpop.xlane.xlu1 %1037 }
 0x6ce   :  { %2786 = vrcp.f32 %v1038_v33 }
 0x6cf   :  { %2788 = vrcp.f32 %v1044_v31 }
 0x6d0   :  { %2790 = vrcp.f32 %v1041_v30 }
 0x6d1   :  { %v1053_v34 = vpop.xlane.xlu0 %1052  ;;  %v2561_v37 = vpop.permute.xlu1 %2560 }
 0x6d2   :  { %v2563_v42 = vunpack.i.h.bf16 %v2561_v37  ;;  %v2562_v43 = vunpack.i.l.bf16 %v2561_v37 }
 0x6d4   :  { %v892_v50 = vpack.c.bf16 %v2563_v42, %v2562_v43 }
 0x6d5   :  { %v1047_v36 = vpop.xlane.xlu0 %1046 }
 0x6d6   :  { %2792 = vrcp.f32 %v1047_v36 }
 0x6d7   :  { %v2785_v39 = vpop.eup %2784 }
 0x6d8   :  { %v1065_v47 = vmul.f32 %v2785_v39, %v2771_v4 }
 0x6d9   :  { %v2556_v40 = vpop.permute.xlu0 %2555 }
 0x6da   :  { %v2558_v44 = vunpack.i.h.bf16 %v2556_v40  ;;  %v2557_v45 = vunpack.i.l.bf16 %v2556_v40 }
 0x6db   :  { %v2787_v41 = vpop.eup %2786 }
 0x6dc   :  { %v1066_v48 = vmul.f32 %v2787_v41, %v2775_v7  ;;  %v893_v49 = vpack.c.bf16 %v2558_v44, %v2557_v45  ;;  %v2789_v57 = vpop.eup %2788 }
 0x6dd   :  { %v2791_v58 = vpop.eup %2790  ;;  %v1068_v59 = vmul.f32 %v2789_v57, %v3166_v5 }
 0x6de   :  { %v1073_v35 = vpack.c.bf16 %v1066_v48, %v1065_v47  ;;  %2471 = vmatprep.subr.bf16.mxu1 %v893_v49  ;;  %v1067_v61 = vmul.f32 %v2791_v58, %v3162_v2 }
 0x6df   :  { %2472 = vmatpush3.bf16.msra.mxu1 %v893_v49 }
 0x6e0   :  { %2479 = vmatprep.mubr.msk.bf16.mxu1 %vm984_vm2, %v1073_v35  ;;  %2473 = vmatprep.subr.bf16.mxu1 %v892_v50  ;;  %v1074_v63 = vpack.c.bf16 %v1068_v59, %v1067_v61  ;;  %v2654_v61 = vld [vmem:[%s3599_s2 + $0x244] ss:$40 sps:$4 sm:$0xff]  }
 0x6e1   :  { %1497 = vmatprep.subr.bf16.mxu0 %v2654_v61  ;;  %v2700_v61 = vld [vmem:[%s3598_s1 + $0x138] sm:$0xff]  }
 0x6e3   :  { %2474 = vmatpush3.bf16.msra.mxu1 %v892_v50  ;;  %v2793_v60 = vpop.eup %2792 }
 0x6e4   :  { %v1069_v0 = vmul.f32 %v2793_v60, %v3176_v16  ;;  %v2648_v16 = vld [vmem:[%s3599_s2 + $0xfc] ss:$40 sps:$4 sm:$0xff]   ;;  %v2652_v60 = vld [vmem:[%s3599_s2 + $0x240] ss:$40 sps:$4 sm:$0xff]  }
 0x6e5   :  { %1498 = vmatpush1.bf16.msra.mxu0 %v2652_v60 }
 0x702   :  { %v1056_v51 = vpop.xlane.xlu1 %1055 }
 0x706   :  { %v1050_v52 = vpop.xlane.xlu1 %1049 }
 0x707   :  { %2794 = vrcp.f32 %v1050_v52 }
 0x708   :  { %2796 = vrcp.f32 %v1056_v51  ;;  %v2210_v51 = vld [vmem:[%s3600_s3 + $0x5] ss:$0 sm:$0xff] }
 0x709   :  { %2798 = vrcp.f32 %v1053_v34 }
 0x70a   :  { %v2566_v53 = vpop.permute.xlu1 %2565 }
 0x70b   :  { %v2568_v54 = vunpack.i.h.bf16 %v2566_v53  ;;  %v2567_v55 = vunpack.i.l.bf16 %v2566_v53 }
 0x70d   :  { %v891_v56 = vpack.c.bf16 %v2568_v54, %v2567_v55 }
 0x70f   :  { %2475 = vmatprep.subr.bf16.mxu1 %v891_v56 }
 0x710   :  { %2476 = vmatpush3.bf16.msra.mxu1 %v891_v56 }
 0x711   :  { %2477 = vmatprep.subr.bf16.mxu1 %v3110_v38 }
 0x714   :  { %v2795_v62 = vpop.eup %2794  ;;  %2478 = vmatpush3.bf16.msra.mxu1 %v3110_v38  ;;  %v2644_v38 = vld [vmem:[%s3599_s2 + $0x23c] ss:$40 sps:$4 sm:$0xff]  }
 0x715   :  { %v1070_v3 = vmul.f32 %v2795_v62, %v2783_v28  ;;  %2487 = vmatprep.subr.bf16.mxu1 %v2842_v1  ;;  %v2797_v4 = vpop.eup %2796  ;;  %v2657_v62 = vld [vmem:[%s3599_s2 + $0x24c] ss:$40 sps:$4 sm:$0xff]  }
 0x716   :  { %v2799_v7 = vpop.eup %2798  ;;  %v1072_v5 = vmul.f32 %v2797_v4, %v3184_v26  ;;  %v2651_v26 = vld [vmem:[%s3599_s2 + $0xc] ss:$40 sps:$4 sm:$0xff]  }
 0x717   :  { %2480 = vmatmul.mubr.msk.bf16.vlgmr.msra.gmra.mxu1 %vm984_vm2, %v1074_v63  ;;  %v1075_v6 = vpack.c.bf16 %v1070_v3, %v1069_v0  ;;  %v1071_v2 = vmul.f32 %v2799_v7, %v3172_v12  ;;  %v2646_v12 = vld [vmem:[%s3599_s2 + $0x19c] ss:$40 sps:$4 sm:$0xff]  }
 0x718   :  { %2488 = vmatpush3.bf16.msra.mxu1 %v2644_v38  ;;  %v2658_v38 = vld [vmem:[%s3599_s2 + $0x1f0] ss:$40 sps:$4 sm:$0xff]  }
 0x719   :  { %2483 = vmatprep.mubr.msk.bf16.mxu1 %vm984_vm2, %v1075_v6  ;;  %v1076_v8 = vpack.c.bf16 %v1072_v5, %v1071_v2  ;;  %2489 = vmatprep.subr.bf16.mxu1 %v2842_v1  ;;  %v2660_v2 = vld [vmem:[%s3599_s2 + $0x1f4] ss:$40 sps:$4 sm:$0xff]  }
 0x71a   :  { %1499 = vmatprep.subr.bf16.mxu0 %v2660_v2  ;;  %v2711_v2 = vld [vmem:[%s3598_s1 + $0x168] sm:$0xff]  }
 0x71b   :  { %1500 = vmatpush1.bf16.msra.mxu0 %v2658_v38  ;;  %v2713_v38 = vld [vmem:[%s3598_s1 + $0x1a0] sm:$0xff]  }
 0x71c   :  { %2490 = vmatpush3.bf16.msra.mxu1 %v2645_v9  ;;  %v2661_v9 = vld [vmem:[%s3599_s2 + $0x1f8] ss:$40 sps:$4 sm:$0xff]  }
 0x71d   :  { %2491 = vmatprep.subr.bf16.mxu1 %v2842_v1 }
 0x71f   :  { %2484 = vmatmul.mubr.msk.bf16.gmra.mxu1 %vm984_vm2, %v1076_v8  ;;  %v2663_v8 = vld [vmem:[%s3599_s2 + $0x1fc] ss:$40 sps:$4 sm:$0xff]  }
 0x720   :  { %2503 = vmatprep.mubr.msk.bf16.mxu1 %vm2843_vm0, %v2842_v1  ;;  %2492 = vmatpush3.bf16.msra.mxu1 %v2646_v12  ;;  %v2666_v12 = vld [vmem:[%s3599_s2 + $0x1a4] ss:$40 sps:$4 sm:$0xff]  }
 0x721   :  { %2493 = vmatprep.subr.bf16.mxu1 %v2842_v1  ;;  %1501 = vmatprep.subr.bf16.mxu0 %v2666_v12  ;;  %v2715_v12 = vld [vmem:[%s3598_s1 + $0x160] sm:$0xff]  }
 0x724   :  { %2494 = vmatpush3.bf16.msra.mxu1 %v2647_v15  ;;  %v2669_v15 = vld [vmem:[%s3599_s2 + $0x1ac] ss:$40 sps:$4 sm:$0xff]  }
 0x725   :  { %2495 = vmatprep.subr.bf16.mxu1 %v2842_v1 }
 0x728   :  { %2496 = vmatpush3.bf16.msra.mxu1 %v2648_v16  ;;  %v2664_v16 = vld [vmem:[%s3599_s2 + $0x1a0] ss:$40 sps:$4 sm:$0xff]  }
 0x729   :  { %2497 = vmatprep.subr.bf16.mxu1 %v2842_v1  ;;  %1502 = vmatpush1.bf16.msra.mxu0 %v2664_v16  ;;  %v2717_v16 = vld [vmem:[%s3598_s1 + $0x198] sm:$0xff]  }
 0x72c   :  { %2498 = vmatpush3.bf16.msra.mxu1 %v2649_v17  ;;  %v2667_v17 = vld [vmem:[%s3599_s2 + $0x1a8] ss:$40 sps:$4 sm:$0xff]  }
 0x72d   :  { %2499 = vmatprep.subr.bf16.mxu1 %v2842_v1 }
 0x730   :  { %2500 = vmatpush3.bf16.msra.mxu1 %v2650_v22  ;;  %v2670_v22 = vld [vmem:[%s3599_s2 + $0x150] ss:$40 sps:$4 sm:$0xff]  }
 0x731   :  { %2501 = vmatprep.subr.bf16.mxu1 %v2842_v1 }
 0x734   :  { %2502 = vmatpush3.bf16.msra.mxu1 %v2651_v26  ;;  %v2676_v26 = vld [vmem:[%s3599_s2 + $0x100] ss:$40 sps:$4 sm:$0xff]  }
 0x735   :  { %1540 = vmatprep.subr.bf16.mxu1 %v2657_v62  ;;  %v2702_v62 = vld [vmem:[%s3598_s1 + $0xf8] sm:$0xff]  }
 0x7d7   :  { %v2481_v19 = vpop.f32.mrf.mxu1 }
 0x7d9   :  { %v1123_v20 = vpop.f32.mrf.mxu1 }
 0x7db   :  { %v2482_v23 = vpop.f32.mrf.mxu1 }
 0x7dc   :  { %v2569_v24 = vpack.i.bf16 %v2482_v23, %v2481_v19  ;;  %v2672_v19 = vld [vmem:[%s3599_s2 + $0x154] ss:$40 sps:$4 sm:$0xff]   ;;  %v2673_v23 = vld [vmem:[%s3599_s2 + $0x158] ss:$40 sps:$4 sm:$0xff]  }
 0x7dd   :  { %v1126_v25 = vpop.f32.mrf.mxu1  ;;  %1503 = vmatprep.subr.bf16.mxu0 %v2672_v19  ;;  %v2719_v19 = vld [vmem:[%s3598_s1 + $0x158] sm:$0xff]  }
 0x7de   :  { %2570 = vrot.lane.b32.xlu1 %v2569_v24, %s2846_s13  ;;  %1504 = vmatpush1.bf16.msra.mxu0 %v2670_v22  ;;  %v2678_v24 = vld [vmem:[%s3599_s2 + $0x104] ss:$40 sps:$4 sm:$0xff]   ;;  %v2721_v22 = vld [vmem:[%s3598_s1 + $0x190] sm:$0xff]  }
 0x7df   :  { %v2485_v27 = vpop.f32.mrf.mxu1  ;;  %1505 = vmatprep.subr.bf16.mxu0 %v2678_v24  ;;  %v2723_v24 = vld [vmem:[%s3598_s1 + $0x150] sm:$0xff]  }
 0x7e1   :  { %v1139_v28 = vpop.f32.mrf.mxu1 }
 0x7e2   :  { %1506 = vmatpush1.bf16.msra.mxu0 %v2676_v26  ;;  %v2725_v26 = vld [vmem:[%s3598_s1 + $0x188] sm:$0xff]  }
 0x7e3   :  { %v2486_v29 = vpop.f32.mrf.mxu1 }
 0x7e4   :  { %v2579_v30 = vpack.i.bf16 %v2486_v29, %v2485_v27  ;;  %v2679_v27 = vld [vmem:[%s3599_s2 + $0x108] ss:$40 sps:$4 sm:$0xff]   ;;  %v2687_v29 = vld [vmem:[%s3599_s2 + $0xbc] ss:$40 sps:$4 sm:$0xff]  }
 0x7e5   :  { %v1142_v31 = vpop.f32.mrf.mxu1 }
 0x7e6   :  { %v2574_v32 = vpack.i.bf16 %v1142_v31, %v1139_v28  ;;  %2580 = vrot.lane.b32.xlu1 %v2579_v30, %s2847_s14  ;;  %v2684_v28 = vld [vmem:[%s3599_s2 + $0xb4] ss:$40 sps:$4 sm:$0xff]   ;;  %v2682_v30 = vld [vmem:[%s3599_s2 + $0xb0] ss:$40 sps:$4 sm:$0xff]  }
 0x7e7   :  { %v2685_v31 = vld [vmem:[%s3599_s2 + $0xb8] ss:$40 sps:$4 sm:$0xff]   ;;  %1507 = vmatprep.subr.bf16.mxu0 %v2684_v28  ;;  %v2727_v28 = vld [vmem:[%s3598_s1 + $0x148] sm:$0xff]  }
 0x7e8   :  { %2575 = vrot.lane.b32.xlu0 %v2574_v32, %s2845_s12  ;;  %1508 = vmatpush1.bf16.msra.mxu0 %v2682_v30  ;;  %v2688_v32 = vld [vmem:[%s3599_s2 + $0x60] ss:$40 sps:$4 sm:$0xff]  }
 0x7e9   :  { %v2729_v30 = vld [vmem:[%s3598_s1 + $0x180] sm:$0xff]  }
 0x850   :  { %v2571_v33 = vpop.permute.xlu1 %2570 }
 0x851   :  { %v2573_v34 = vunpack.i.h.bf16 %v2571_v33  ;;  %v2572_v36 = vunpack.i.l.bf16 %v2571_v33  ;;  %v2690_v33 = vld [vmem:[%s3599_s2 + $0x64] ss:$40 sps:$4 sm:$0xff]  }
 0x852   :  { %1509 = vmatprep.subr.bf16.mxu0 %v2690_v33  ;;  %v2144_v33 = vld [vmem:[%s3601_s4 + $0x1] ss:$4 sm:$0xf] }
 0x853   :  { %v1178_v42 = vsel %vm894_vm1, %v1123_v20, %v2572_v36  ;;  %v1179_v43 = vsel %vm894_vm1, %v1126_v25, %v2573_v34  ;;  %v2675_v20 = vld [vmem:[%s3599_s2 + $0x15c] ss:$40 sps:$4 sm:$0xff]   ;;  %v2681_v25 = vld [vmem:[%s3599_s2 + $0x10c] ss:$40 sps:$4 sm:$0xff]   ;;  %v2691_v34 = vld [vmem:[%s3599_s2 + $0x68] ss:$40 sps:$4 sm:$0xff]   ;;  %1510 = vmatpush1.bf16.msra.mxu0 %v2688_v32 }
 0x854   :  { %v2693_v36 = vld [vmem:[%s3599_s2 + $0x6c] ss:$40 sps:$4 sm:$0xff]   ;;  %v2731_v32 = vld [vmem:[%s3598_s1 + $0x140] sm:$0xff]  }
 0x858   :  { %v2581_v37 = vpop.permute.xlu1 %2580 }
 0x859   :  { %v2583_v44 = vunpack.i.h.bf16 %v2581_v37  ;;  %v2582_v45 = vunpack.i.l.bf16 %v2581_v37  ;;  %v2696_v37 = vld [vmem:[%s3599_s2 + $0x14] ss:$40 sps:$4 sm:$0xff]  }
 0x85a   :  { %v2576_v39 = vpop.permute.xlu0 %2575  ;;  %1511 = vmatprep.subr.bf16.mxu0 %v2696_v37  ;;  %v1328_v37 = vrot.slane %v2144_v33, %v605_v13 }
 0x85b   :  { %v2578_v40 = vunpack.i.h.bf16 %v2576_v39  ;;  %v2577_v41 = vunpack.i.l.bf16 %v2576_v39  ;;  %v2699_v39 = vld [vmem:[%s3599_s2 + $0x1c] ss:$40 sps:$4 sm:$0xff]  }
 0x85d   :  { %v1181_v47 = vsel %vm984_vm2, %v1179_v43, %v2578_v40  ;;  %v1180_v48 = vsel %vm984_vm2, %v1178_v42, %v2577_v41  ;;  %v2694_v40 = vld [vmem:[%s3599_s2 + $0x10] ss:$40 sps:$4 sm:$0xff]  }
 0x85e   :  { %v1184_v49 = vsel %vm1182_vm3, %v1181_v47, %v2583_v44  ;;  %v1183_v35 = vsel %vm1182_vm3, %v1180_v48, %v2582_v45  ;;  %v2697_v41 = vld [vmem:[%s3599_s2 + $0x18] ss:$40 sps:$4 sm:$0xff]   ;;  %1512 = vmatpush1.bf16.msra.mxu0 %v2694_v40 }
 0x85f   :  { %v1185_v50 = vpack.c.bf16 %v1184_v49, %v1183_v35  ;;  %2369 = vmatprep.subr.bf16.mxu0 %v2700_v61 }
 0x861   :  { %2504 = vmatmul.mubr.bf16.vlgmr.msra.gmra.mxu1 %v1185_v50  ;;  %v2219_v50 = vld [vmem:[%s3600_s3 + $0x6] ss:$0 sm:$0xff] }
 0x862   :  { %1572 = vmatprep.mubr.bf16.mxu1 %v2844_v46 }
 0x921   :  { %v1272_v52 = vpop.f32.mrf.mxu1 }
 0x922   :  { %v1273_v53 = vadd.f32 %v2210_v51, %v1272_v52 }
 0x923   :  { %v2505_v54 = vpop.f32.mrf.mxu1 }
 0x924   :  { %v3248_v55 = vadd.f32 %v1273_v53, %v2987_v18  ;;  %v2655_v18 = vld [vmem:[%s3599_s2 + $0x248] ss:$40 sps:$4 sm:$0xff]   ;;  %v2220_v54 = vld [vmem:[%s3600_s3 + $0x7] ss:$0 sm:$0xff] }
 0x925   :  { %v1275_v56 = vpop.f32.mrf.mxu1  ;;  %1541 = vmatpush1.bf16.msra.mxu1 %v2655_v18  ;;  %v2701_v18 = vld [vmem:[%s3598_s1 + $0x1b8] sm:$0xff]  }
 0x926   :  { %v1276_v57 = vadd.f32 %v2210_v51, %v1275_v56  ;;  %1281 = vadd.xlane.f32.xlu0 %v3248_v55  ;;  %1542 = vmatprep.subr.bf16.mxu1 %v2663_v8  ;;  %v2712_v8 = vld [vmem:[%s3598_s1 + $0x120] sm:$0xff]  }
 0x927   :  { %v2506_v58 = vpop.f32.mrf.mxu1 }
 0x928   :  { %v3252_v59 = vadd.f32 %v1276_v57, %v2990_v21 }
 0x929   :  { %1543 = vmatpush1.bf16.msra.mxu1 %v2661_v9  ;;  %v2714_v9 = vld [vmem:[%s3598_s1 + $0xe0] sm:$0xff]  }
 0x92a   :  { %1283 = vadd.xlane.f32.xlu1 %v3252_v59  ;;  %1544 = vmatprep.subr.bf16.mxu1 %v2669_v15  ;;  %v2716_v15 = vld [vmem:[%s3598_s1 + $0x118] sm:$0xff]  }
 0x92d   :  { %1545 = vmatpush1.bf16.msra.mxu1 %v2667_v17  ;;  %v2718_v17 = vld [vmem:[%s3598_s1 + $0xd8] sm:$0xff]  }
 0x92e   :  { %1546 = vmatprep.subr.bf16.mxu1 %v2675_v20  ;;  %v2720_v20 = vld [vmem:[%s3598_s1 + $0x110] sm:$0xff]  }
 0x931   :  { %1547 = vmatpush1.bf16.msra.mxu1 %v2673_v23  ;;  %v2722_v23 = vld [vmem:[%s3598_s1 + $0xd0] sm:$0xff]  }
 0x932   :  { %1548 = vmatprep.subr.bf16.mxu1 %v2681_v25  ;;  %v2724_v25 = vld [vmem:[%s3598_s1 + $0x108] sm:$0xff]  }
 0x935   :  { %1549 = vmatpush1.bf16.msra.mxu1 %v2679_v27  ;;  %v2726_v27 = vld [vmem:[%s3598_s1 + $0xc8] sm:$0xff]  }
 0x936   :  { %1550 = vmatprep.subr.bf16.mxu1 %v2687_v29  ;;  %v2728_v29 = vld [vmem:[%s3598_s1 + $0x100] sm:$0xff]  }
 0x939   :  { %1551 = vmatpush1.bf16.msra.mxu1 %v2685_v31  ;;  %v2730_v31 = vld [vmem:[%s3598_s1 + $0xc0] sm:$0xff]  }
 0x93a   :  { %1552 = vmatprep.subr.bf16.mxu1 %v2693_v36  ;;  %v1320_v36 = vrot.slane %v2144_v33, %v3094_v11 }
 0x93d   :  { %1553 = vmatpush1.bf16.msra.mxu1 %v2691_v34  ;;  %v1331_v34 = vsub.s32 3, %v3091_v10 }
 0x93e   :  { %1554 = vmatprep.subr.bf16.mxu1 %v2699_v39  ;;  %v1324_v39 = vrot.slane %v2144_v33, %v3101_v14 }
 0x93f   :  { %v1332_v40 = vrot.slane %v2144_v33, %v1331_v34 }
 0x941   :  { %1555 = vmatpush1.bf16.msra.mxu1 %v2697_v41 }
 0x942   :  { %2391 = vmatprep.subr.bf16.mxu1 %v2701_v18 }
 0x9af   :  { %v1282_v21 = vpop.xlane.xlu0 %1281 }
 0x9b0   :  { %v1285_v63 = vmul.f32 0.0078125, %v1282_v21  ;;  %v2703_v21 = vld [vmem:[%s3598_s1 + $0x178] sm:$0xff]  }
 0x9b2   :  { %v3268_v0 = vsub.f32 %v3248_v55, %v1285_v63  ;;  %v2704_v63 = vld [vmem:[%s3598_s1 + $0x130] sm:$0xff]  }
 0x9b3   :  { %v1284_v3 = vpop.xlane.xlu1 %1283 }
 0x9b4   :  { %v1286_v4 = vmul.f32 0.0078125, %v1284_v3  ;;  %v1289_v6 = vmul.f32 %v3268_v0, %v3268_v0  ;;  %v2706_v3 = vld [vmem:[%s3598_s1 + $0xf0] sm:$0xff]  }
 0x9b6   :  { %v3273_v7 = vsub.f32 %v3252_v59, %v1286_v4  ;;  %1291 = vadd.xlane.f32.xlu0 %v1289_v6  ;;  %v2707_v4 = vld [vmem:[%s3598_s1 + $0x170] sm:$0xff]   ;;  %v2708_v6 = vld [vmem:[%s3598_s1 + $0x128] sm:$0xff]  }
 0x9b8   :  { %v1290_v5 = vmul.f32 %v3273_v7, %v3273_v7 }
 0x9ba   :  { %1293 = vadd.xlane.f32.xlu0 %v1290_v5  ;;  %v2710_v5 = vld [vmem:[%s3598_s1 + $0xe8] sm:$0xff]  }
 0xa3f   :  { %v1292_v42 = vpop.xlane.xlu0 %1291 }
 0xa40   :  { %v1295_v43 = vmul.f32 0.0078125, %v1292_v42 }
 0xa42   :  { %v1297_v44 = vadd.f32 1e-05, %v1295_v43 }
 0xa43   :  { %v1294_v45 = vpop.xlane.xlu0 %1293 }
 0xa44   :  { %2800 = vrsqrt.f32 %v1297_v44  ;;  %v1296_v47 = vmul.f32 0.0078125, %v1294_v45 }
 0xa46   :  { %v1298_v48 = vadd.f32 1e-05, %v1296_v47 }
 0xa48   :  { %2802 = vrsqrt.f32 %v1298_v48 }
 0xa51   :  { %v2801_v49 = vpop.eup %2800 }
 0xa52   :  { %v1301_v35 = vmul.f32 %v2801_v49, %v3268_v0  ;;  %v2705_v0 = vld [vmem:[%s3598_s1 + $0x1b0] sm:$0xff]  }
 0xa54   :  { %v1307_v53 = vmul.f32 %v2219_v50, %v1301_v35 }
 0xa55   :  { %v2803_v51 = vpop.eup %2802 }
 0xa56   :  { %v1302_v52 = vmul.f32 %v2803_v51, %v3273_v7  ;;  %v1313_v57 = vadd.f32 %v2220_v54, %v1307_v53  ;;  %v2709_v7 = vld [vmem:[%s3598_s1 + $0x1a8] sm:$0xff]  }
 0xa58   :  { %v1308_v56 = vmul.f32 %v2219_v50, %v1302_v52 }
 0xa5a   :  { %v1314_v58 = vadd.f32 %v2220_v54, %v1308_v56 }
 0xa5c   :  { %v1315_v60 = vpack.c.bf16 %v1314_v58, %v1313_v57 }
 0xa5e   :  { %1530 = vmatmul.mubr.bf16.vlgmr.msra.gmra.mxu0 %v1315_v60  ;;  %1573 = vmatmul.mubr.bf16.vlgmr.msra.gmra.mxu1 %v1315_v60 }
 0xa5f   :  { %2370 = vmatpush3.bf16.msra.mxu0 %v2702_v62  ;;  %2392 = vmatpush3.bf16.msra.mxu1 %v2703_v21 }
 0xa60   :  { %2371 = vmatprep.subr.bf16.mxu0 %v2704_v63  ;;  %2393 = vmatprep.subr.bf16.mxu1 %v2705_v0 }
 0xa63   :  { %2372 = vmatpush3.bf16.msra.mxu0 %v2706_v3  ;;  %2394 = vmatpush3.bf16.msra.mxu1 %v2707_v4 }
 0xa64   :  { %2373 = vmatprep.subr.bf16.mxu0 %v2708_v6  ;;  %2395 = vmatprep.subr.bf16.mxu1 %v2709_v7 }
 0xa67   :  { %2374 = vmatpush3.bf16.msra.mxu0 %v2710_v5  ;;  %2396 = vmatpush3.bf16.msra.mxu1 %v2711_v2 }
 0xa68   :  { %2375 = vmatprep.subr.bf16.mxu0 %v2712_v8  ;;  %2397 = vmatprep.subr.bf16.mxu1 %v2713_v38 }
 0xa6b   :  { %2376 = vmatpush3.bf16.msra.mxu0 %v2714_v9  ;;  %2398 = vmatpush3.bf16.msra.mxu1 %v2715_v12 }
 0xa6c   :  { %2377 = vmatprep.subr.bf16.mxu0 %v2716_v15  ;;  %2399 = vmatprep.subr.bf16.mxu1 %v2717_v16 }
 0xa6f   :  { %2378 = vmatpush3.bf16.msra.mxu0 %v2718_v17  ;;  %2400 = vmatpush3.bf16.msra.mxu1 %v2719_v19 }
 0xa70   :  { %2379 = vmatprep.subr.bf16.mxu0 %v2720_v20  ;;  %2401 = vmatprep.subr.bf16.mxu1 %v2721_v22 }
 0xa73   :  { %2380 = vmatpush3.bf16.msra.mxu0 %v2722_v23  ;;  %2402 = vmatpush3.bf16.msra.mxu1 %v2723_v24 }
 0xa74   :  { %2381 = vmatprep.subr.bf16.mxu0 %v2724_v25  ;;  %2403 = vmatprep.subr.bf16.mxu1 %v2725_v26 }
 0xa77   :  { %2382 = vmatpush3.bf16.msra.mxu0 %v2726_v27  ;;  %2404 = vmatpush3.bf16.msra.mxu1 %v2727_v28 }
 0xa78   :  { %2383 = vmatprep.subr.bf16.mxu0 %v2728_v29  ;;  %2405 = vmatprep.subr.bf16.mxu1 %v2729_v30 }
 0xa7b   :  { %2384 = vmatpush3.bf16.msra.mxu0 %v2730_v31  ;;  %2406 = vmatpush3.bf16.msra.mxu1 %v2731_v32 }
 0xa7c   :  { %2507 = vmatprep.subr.bf16.mxu1 %v2842_v1 }
 0xb1e   :  { %v1531_v41 = vpop.f32.mrf.mxu0  ;;  %v1574_v42 = vpop.f32.mrf.mxu1 }
 0xb1f   :  { %v3474_v43 = vadd.f32 %v1531_v41, %v1320_v36  ;;  %v3476_v44 = vadd.f32 %v1574_v42, %v1328_v37 }
 0xb20   :  { %v1533_v45 = vpop.f32.mrf.mxu0  ;;  %v1576_v47 = vpop.f32.mrf.mxu1 }
 0xb21   :  { %v1583_v48 = vmul.f32 %v3474_v43, %v3474_v43  ;;  %v1585_v49 = vmul.f32 %v3476_v44, %v3476_v44  ;;  %v3482_v35 = vadd.f32 %v1533_v45, %v1324_v39  ;;  %v3484_v10 = vadd.f32 %v1576_v47, %v1332_v40 }
 0xb22   :  { %v1535_v13 = vpop.f32.mrf.mxu0  ;;  %v1578_v50 = vpop.f32.mrf.mxu1 }
 0xb23   :  { %v1591_v51 = vmul.f32 %v1583_v48, %v3474_v43  ;;  %v1593_v52 = vmul.f32 %v1585_v49, %v3476_v44  ;;  %v1584_v53 = vmul.f32 %v3482_v35, %v3482_v35  ;;  %v1586_v54 = vmul.f32 %v3484_v10, %v3484_v10 }
 0xb24   :  { %v3492_v56 = vadd.f32 %v1535_v13, %v1320_v36  ;;  %v3494_v57 = vadd.f32 %v1578_v50, %v1328_v37  ;;  %v1537_v58 = vpop.f32.mrf.mxu0  ;;  %v1580_v60 = vpop.f32.mrf.mxu1 }
 0xb25   :  { %v1599_v61 = vmul.f32 0.044715, %v1591_v51  ;;  %v1601_v18 = vmul.f32 0.044715, %v1593_v52  ;;  %v1592_v62 = vmul.f32 %v1584_v53, %v3482_v35  ;;  %v1594_v21 = vmul.f32 %v1586_v54, %v3484_v10 }
 0xb26   :  { %v1587_v63 = vmul.f32 %v3492_v56, %v3492_v56  ;;  %v1589_v0 = vmul.f32 %v3494_v57, %v3494_v57  ;;  %v3502_v3 = vadd.f32 %v1537_v58, %v1324_v39  ;;  %v3504_v4 = vadd.f32 %v1580_v60, %v1332_v40 }
 0xb27   :  { %v1607_v6 = vadd.f32 %v1599_v61, %v3474_v43  ;;  %v1609_v7 = vadd.f32 %v1601_v18, %v3476_v44  ;;  %v1600_v5 = vmul.f32 0.044715, %v1592_v62  ;;  %v1602_v2 = vmul.f32 0.044715, %v1594_v21 }
 0xb28   :  { %v1595_v8 = vmul.f32 %v1587_v63, %v3492_v56  ;;  %v1597_v38 = vmul.f32 %v1589_v0, %v3494_v57  ;;  %v1588_v9 = vmul.f32 %v3502_v3, %v3502_v3  ;;  %v1590_v12 = vmul.f32 %v3504_v4, %v3504_v4 }
 0xb29   :  { %v1615_v15 = vmul.f32 0.7978846, %v1607_v6  ;;  %v1617_v16 = vmul.f32 0.7978846, %v1609_v7  ;;  %v1608_v17 = vadd.f32 %v1600_v5, %v3482_v35  ;;  %v1610_v19 = vadd.f32 %v1602_v2, %v3484_v10 }
 0xb2a   :  { %v1603_v20 = vmul.f32 0.044715, %v1595_v8  ;;  %v1605_v22 = vmul.f32 0.044715, %v1597_v38  ;;  %v1596_v23 = vmul.f32 %v1588_v9, %v3502_v3  ;;  %v1598_v24 = vmul.f32 %v1590_v12, %v3504_v4 }
 0xb2b   :  { %2804 = vtanh.f32 %v1615_v15  ;;  %v1616_v25 = vmul.f32 0.7978846, %v1608_v17  ;;  %v1618_v26 = vmul.f32 0.7978846, %v1610_v19 }
 0xb2c   :  { %2806 = vtanh.f32 %v1617_v16  ;;  %v1611_v27 = vadd.f32 %v1603_v20, %v3492_v56  ;;  %v1613_v28 = vadd.f32 %v1605_v22, %v3494_v57  ;;  %v1604_v29 = vmul.f32 0.044715, %v1596_v23  ;;  %v2744_v22 = vld [vmem:[%s3599_s2 + $0x110] ss:$40 sps:$4 sm:$0xff]   ;;  %v2749_v23 = vld [vmem:[%s3599_s2 + $0xc4] ss:$40 sps:$4 sm:$0xff]  }
 0xb2d   :  { %2808 = vtanh.f32 %v1616_v25  ;;  %v1606_v30 = vmul.f32 0.044715, %v1598_v24  ;;  %v2747_v24 = vld [vmem:[%s3599_s2 + $0xc0] ss:$40 sps:$4 sm:$0xff]   ;;  %v2752_v25 = vld [vmem:[%s3599_s2 + $0x74] ss:$40 sps:$4 sm:$0xff]  }
 0xb2e   :  { %2810 = vtanh.f32 %v1618_v26  ;;  %v1619_v31 = vmul.f32 0.7978846, %v1611_v27  ;;  %v1621_v32 = vmul.f32 0.7978846, %v1613_v28  ;;  %v1612_v33 = vadd.f32 %v1604_v29, %v3502_v3  ;;  %v2750_v26 = vld [vmem:[%s3599_s2 + $0x70] ss:$40 sps:$4 sm:$0xff]  }
 0xb2f   :  { %v1614_v34 = vadd.f32 %v1606_v30, %v3504_v4  ;;  %v2755_v27 = vld [vmem:[%s3599_s2 + $0x24] ss:$40 sps:$4 sm:$0xff]   ;;  %v2753_v28 = vld [vmem:[%s3599_s2 + $0x20] ss:$40 sps:$4 sm:$0xff]  }
 0xb30   :  { %2812 = vtanh.f32 %v1619_v31  ;;  %v1620_v36 = vmul.f32 0.7978846, %v1612_v33  ;;  %v2253_v31 = vld [vmem:[%s3600_s3 + $0x8] ss:$0 sm:$0xff] }
 0xb31   :  { %2814 = vtanh.f32 %v1621_v32  ;;  %v1622_v37 = vmul.f32 0.7978846, %v1614_v34 }
 0xb32   :  { %2816 = vtanh.f32 %v1620_v36 }
 0xb33   :  { %2818 = vtanh.f32 %v1622_v37 }
 0xb38   :  { %v2805_v39 = vpop.eup %2804 }
 0xb39   :  { %v2807_v40 = vpop.eup %2806  ;;  %v1631_v48 = vadd.f32 1.0, %v2805_v39 }
 0xb3a   :  { %v2809_v41 = vpop.eup %2808  ;;  %v1633_v50 = vadd.f32 1.0, %v2807_v40 }
 0xb3b   :  { %v2811_v42 = vpop.eup %2810  ;;  %v1632_v45 = vadd.f32 1.0, %v2809_v41  ;;  %v1639_v18 = vmul.f32 0.5, %v1631_v48 }
 0xb3c   :  { %v1634_v49 = vadd.f32 1.0, %v2811_v42  ;;  %v1641_v0 = vmul.f32 0.5, %v1633_v50 }
 0xb3d   :  { %v2813_v47 = vpop.eup %2812  ;;  %v1640_v61 = vmul.f32 0.5, %v1632_v45  ;;  %v1647_v9 = vmul.f32 %v1639_v18, %v3474_v43  ;;  %v2732_v43 = vld [vmem:[%s3599_s2 + $0x250] ss:$40 sps:$4 sm:$0xff]  }
 0xb3e   :  { %v2815_v13 = vpop.eup %2814  ;;  %v1635_v51 = vadd.f32 1.0, %v2813_v47  ;;  %v1642_v63 = vmul.f32 0.5, %v1634_v49  ;;  %v1649_v16 = vmul.f32 %v1641_v0, %v3476_v44  ;;  %v2734_v44 = vld [vmem:[%s3599_s2 + $0x254] ss:$40 sps:$4 sm:$0xff]  }
 0xb3f   :  { %v2817_v52 = vpop.eup %2816  ;;  %v1637_v53 = vadd.f32 1.0, %v2815_v13  ;;  %v1648_v8 = vmul.f32 %v1640_v61, %v3482_v35  ;;  %v2737_v35 = vld [vmem:[%s3599_s2 + $0x204] ss:$40 sps:$4 sm:$0xff]   ;;  %2077 = vmatprep.subr.bf16.mxu0 %v2734_v44 }
 0xb40   :  { %v2819_v54 = vpop.eup %2818  ;;  %v1643_v58 = vmul.f32 0.5, %v1635_v51  ;;  %v1636_v60 = vadd.f32 1.0, %v2817_v52  ;;  %v1650_v12 = vmul.f32 %v1642_v63, %v3484_v10  ;;  %v2738_v10 = vld [vmem:[%s3599_s2 + $0x1b0] ss:$40 sps:$4 sm:$0xff]   ;;  %v47_v52 = vld [vmem:[%s3602_s5 + $0x40] sm:$0x3] }
 0xb41   :  { %v1645_v62 = vmul.f32 0.5, %v1637_v53  ;;  %v1638_v21 = vadd.f32 1.0, %v2819_v54  ;;  %v1939_v54 = vpack.c.bf16 %v47_v52, %v47_v52  ;;  %s2848_s5 = smov [#allocation2]  }
 0xb42   :  { %v1644_v6 = vmul.f32 0.5, %v1636_v60  ;;  %v1651_v7 = vmul.f32 %v1643_v58, %v3492_v56  ;;  %s2136_s20 = sshll.u32 %s2848_s5, 4  ;;  %s2137_s20 = int_to_ptr.vmem [resolvable:$true] %s2136_s20 }
 0xb43   :  { %v1646_v5 = vmul.f32 0.5, %v1638_v21  ;;  %v1653_v2 = vmul.f32 %v1645_v62, %v3494_v57  ;;  %v2743_v57 = vld [vmem:[%s3599_s2 + $0x164] ss:$40 sps:$4 sm:$0xff]   ;;  %s2820_s21 = scalar_lea.vmem %s2137_s20, 64  ;;  %p2825_p1 = scmp.lt.s32.totalorder %s2137_s20, %s2137_s20 }
 0xb44   :  { %v1652_v38 = vmul.f32 %v1644_v6, %v3502_v3  ;;  %v1655_v20 = vpack.c.bf16 %v1651_v7, %v1647_v9  ;;  %v2741_v3 = vld [vmem:[%s3599_s2 + $0x160] ss:$40 sps:$4 sm:$0xff]   ;;  %p2821_p0 = scmp.ne.s32.totalorder %s2137_s20, %s2820_s21  ;;  %p2826_p2 = scmp.lt.s32.totalorder %s2820_s21, %s2820_s21 }
 0xb45   :  { %v1654_v15 = vmul.f32 %v1646_v5, %v3504_v4  ;;  %v1657_v56 = vpack.c.bf16 %v1653_v2, %v1649_v16  ;;  %v2746_v4 = vld [vmem:[%s3599_s2 + $0x114] ss:$40 sps:$4 sm:$0xff]  }
 0xb46   :  { %v1656_v17 = vpack.c.bf16 %v1652_v38, %v1648_v8  ;;  %p2827_p3 = por %p2826_p2, %p2825_p1 }
 0xb47   :  { %v1658_v19 = vpack.c.bf16 %v1654_v15, %v1650_v12 }
 0xb48   :  { %1887 = vmatprep.mubr.bf16.mxu0 %v1656_v17  ;;  %p2828_p4 = pnand %p2827_p3, %p2821_p0 }
 0xb49   :  { %1928 = vmatprep.mubr.bf16.mxu1 %v1658_v19  ;;  %1888 = vmatmul.mubr.bf16.vlgmr.msra.gmra.mxu0 %v1655_v20 }
 0xb4a   :  { %1929 = vmatmul.mubr.bf16.vlgmr.msra.gmra.mxu1 %v1657_v56  ;;  %2109 = vmatprep.mubr.bf16.mxu0 %v2844_v46  ;;  %v2735_v46 = vld [vmem:[%s3599_s2 + $0x200] ss:$40 sps:$4 sm:$0xff]  }
 0xb4b   :  { %2509 = vmatprep.mubr.msk.bf16.mxu1 %vm2843_vm0, %v2842_v1  ;;  %2078 = vmatpush1.bf16.msra.mxu0 %v2732_v43  ;;  %v2740_v1 = vld [vmem:[%s3599_s2 + $0x1b4] ss:$40 sps:$4 sm:$0xff]  }
 0xb4c   :  { %2079 = vmatprep.subr.bf16.mxu0 %v2737_v35 }
 0xb4f   :  { %2080 = vmatpush1.bf16.msra.mxu0 %v2735_v46 }
 0xb50   :  { %2081 = vmatprep.subr.bf16.mxu0 %v2740_v1 }
 0xb53   :  { %2082 = vmatpush1.bf16.msra.mxu0 %v2738_v10 }
 0xb54   :  { %2083 = vmatprep.subr.bf16.mxu0 %v2743_v57 }
 0xb57   :  { %2084 = vmatpush1.bf16.msra.mxu0 %v2741_v3 }
 0xb58   :  { %2085 = vmatprep.subr.bf16.mxu0 %v2746_v4 }
 0xb5b   :  { %2086 = vmatpush1.bf16.msra.mxu0 %v2744_v22 }
 0xb5c   :  { %2087 = vmatprep.subr.bf16.mxu0 %v2749_v23 }
 0xb5f   :  { %2088 = vmatpush1.bf16.msra.mxu0 %v2747_v24 }
 0xb60   :  { %2089 = vmatprep.subr.bf16.mxu0 %v2752_v25 }
 0xb63   :  { %2090 = vmatpush1.bf16.msra.mxu0 %v2750_v26 }
 0xb64   :  { %2091 = vmatprep.subr.bf16.mxu0 %v2755_v27 }
 0xb67   :  { %2092 = vmatpush1.bf16.msra.mxu0 %v2753_v28 }
 0xc09   :  { %v2385_v29 = vpop.f32.mrf.mxu0 }
 0xc0a   :  { %v2407_v30 = vpop.f32.mrf.mxu1 }
 0xc0b   :  { %v2386_v32 = vpop.f32.mrf.mxu0 }
 0xc0c   :  { %v2387_v33 = vadd.f32 %v2386_v32, %v2385_v29  ;;  %v2408_v34 = vpop.f32.mrf.mxu1 }
 0xc0d   :  { %v2388_v36 = vpop.f32.mrf.mxu0  ;;  %v2409_v41 = vadd.f32 %v2408_v34, %v2407_v30 }
 0xc0e   :  { %v1890_v37 = vadd.f32 %v2387_v33, %v2253_v31  ;;  %v2410_v39 = vpop.f32.mrf.mxu1 }
 0xc0f   :  { %v2389_v40 = vpop.f32.mrf.mxu0 }
 0xc10   :  { %v2390_v42 = vadd.f32 %v2389_v40, %v2388_v36  ;;  %v2411_v45 = vpop.f32.mrf.mxu1  ;;  %v1931_v47 = vadd.f32 %v2409_v41, %v1890_v37 }
 0xc11   :  { %v2412_v49 = vadd.f32 %v2411_v45, %v2410_v39 }
 0xc12   :  { %v1893_v48 = vadd.f32 %v2390_v42, %v2253_v31  ;;  %v1937_v50 = vadd.f32 %v1931_v47, %v3248_v55  ;;  %v2145_v55 = vld [vmem:[%s3601_s4 + $0x2] ss:$4 sm:$0x3] }
 0xc13   :  { %v1994_v21 = vrot.slane %v2145_v55, %v3101_v14 }
 0xc14   :  { %v1934_v13 = vadd.f32 %v2412_v49, %v1893_v48 }
 0xc16   :  { %v1938_v51 = vadd.f32 %v1934_v13, %v3252_v59  ;;  %v1990_v59 = vrot.slane %v2145_v55, %v3094_v11 }
 0xc18   :  { %v1940_v53 = vpack.c.bf16 %v1938_v51, %v1937_v50 }
 0xc1a   :  { %2508 = vmatpush3.bf16.msra.mxu1 %v1940_v53 }
 0xc1d   :  { %2510 = vmatmul.mubr.msk.bf16.vlgmr.msra.gmra.mxu1 %vm1941_vm4, %v1939_v54 }
 0xcdd   :  { %v1979_v58 = vpop.f32.mrf.mxu1 }
 0xcde   :  { %v1985_v60 = vpack.c.bf16 %v1979_v58, %v1979_v58 }
 0xcdf   :  { %v2511_v61 = vpop.f32.mrf.mxu1 }
 0xce0   :  { %2110 = vmatmul.mubr.bf16.vlgmr.msra.gmra.mxu0 %v1985_v60 }
 0xce1   :  { %v1982_v18 = vpop.f32.mrf.mxu1 }
 0xce3   :  { %v2512_v62 = vpop.f32.mrf.mxu1 }
 0xda0   :  { %v2111_v63 = vpop.f32.mrf.mxu0 }
 0xda1   :  { %v2112_v6 = vadd.f32 %v2111_v63, %v1990_v59 }
 0xda2   :  { %v2113_v0 = vpop.f32.mrf.mxu0 }
 0xda3   :  { %v2114_v7 = vadd.f32 %v2113_v0, %v1994_v21 }
 0xda4   :  { %v2115_v5 = vpop.f32.mrf.mxu0 }
 0xda5   :  { %v2120_v2 = vcombine.low %v2112_v6, %v2114_v7 }
 0xda6   :  { %v2116_v8 = vpop.f32.mrf.mxu0 }
 0xda7   :  { %2303 = vst.sshfl [vmem:[#allocation2] sm:$0x33 pattern:$0x76325410] %v2120_v2 }
 0xda8   :  { %2831 = shalt.err (!%p2828_p4)
}
 0xda9   :  { %2139 = dma.vmem_to_hbm [thread:$0]  %s2137_s20, 64, %s3603_s6, [#allocation3]  }
 0xdaa   :  { %2840 = dma.done.wait [#allocation3], 64  }
 0xdab   :  { %2841 = vsyncadd [#allocation3], 4294967232 }
 0xdac   :  { %2143 = vsyncpa [#allocation3], 1 }

</bundles_post_ra>
